<compile_context>
chip_gen: v7x
topology: tpu7x:2x2x1
jax: 0.10.0
libtpu: 0.0.40
codegen_flags: <defaults>
</compile_context>

<pallas_src>
import jax
import jax.numpy as jnp
from jax import lax
from jax.experimental import pallas as pl
from jax.experimental.pallas import tpu as pltpu

# Small shapes consistent with the module.
B = 2            # batch
T = 8            # sequence length
N_NODES = 16     # graph nodes
DIM_IN = 4       # input channels
DIM_OUT = 4      # output channels
EMBED = 32       # node embedding dim
CHEB_K = 3       # Chebyshev order
BT = B * T


def _avwgcn_kernel(x_ref, e_ref, et_ref, pool_ref, o_ref):
    # x_ref   : (N, C*BT)        Xcat[m, i*BT + bt] = x[b, t, m, i]
    # e_ref   : (N, D)           node embeddings
    # et_ref  : (D, N)           node embeddings, transposed (wrapper glue)
    # pool_ref: (D, K*C*O + O)   [weights_pool flat | bias_pool]
    # o_ref   : (O*N, BT)        out[o*N + n, bt]
    n, c, o_dim, k_cheb, bt = N_NODES, DIM_IN, DIM_OUT, CHEB_K, BT

    e = e_ref[...]
    xc = x_ref[...]

    # supports = softmax(relu(E @ E^T), axis=1)  -- stable softmax over lanes.
    a = jnp.dot(e, et_ref[...], preferred_element_type=jnp.float32)
    a = jnp.maximum(a, 0.0)
    ex = jnp.exp(a - jnp.max(a, axis=1, keepdims=True))
    s = ex * (1.0 / jnp.sum(ex, axis=1, keepdims=True))

    # Chebyshev support stack: T0 = I, T1 = S, Tk = 2 S T_{k-1} - T_{k-2}.
    rows = lax.broadcasted_iota(jnp.int32, (n, n), 0)
    cols = lax.broadcasted_iota(jnp.int32, (n, n), 1)
    eye = (rows == cols).astype(jnp.float32)
    cheb = [eye, s]
    for _ in range(2, k_cheb):
        cheb.append(2.0 * jnp.dot(s, cheb[-1],
                                  preferred_element_type=jnp.float32)
                    - cheb[-2])

    # Graph propagation: G_k[n, i*BT + bt] = sum_m T_k[n, m] * x[b, t, m, i].
    # k = 0 is the identity support -> G_0 = Xcat (no matmul needed).
    g_list = [xc]
    for k in range(1, k_cheb):
        g_list.append(jnp.dot(cheb[k], xc,
                              preferred_element_type=jnp.float32))

    # Adaptive per-node weights and bias from one matmul against the packed pool:
    #   w_n[n, k*C*O + i*O + o] = sum_d E[n,d] weights_pool[d,k,i,o]
    #   b_n[n, o]               = sum_d E[n,d] bias_pool[d,o]
    wb = jnp.dot(e, pool_ref[...], preferred_element_type=jnp.float32)
    kco = k_cheb * c * o_dim
    w_n = wb[:, :kco]          # (N, K*C*O)
    b_n = wb[:, kco:]          # (N, O)

    # Per-node contraction:
    #   out[bt, n, o] = sum_{k,i} G_k[n, i*BT+bt] * w_n[n, (k*C+i)*O + o] + b_n[n, o]
    # Fully unrolled VPU multiply-accumulate (K*C*O = 48 terms on (N, BT) tiles).
    accs = [jnp.zeros((n, bt), jnp.float32) for _ in range(o_dim)]
    for k in range(k_cheb):
        gk = g_list[k]
        for i in range(c):
            g = gk[:, i * bt:(i + 1) * bt]                  # (N, BT), static slice
            base = (k * c + i) * o_dim
            for o in range(o_dim):
                w_col = w_n[:, base + o:base + o + 1]       # (N, 1)
                accs[o] = accs[o] + g * w_col
    outs = [accs[o] + b_n[:, o:o + 1] for o in range(o_dim)]

    # Single full-block store (sublane concat at 8-aligned boundaries).
    o_ref[...] = jnp.concatenate(outs, axis=0)              # (O*N, BT)


def avwgcn_forward_pallas(x, node_embeddings, weights_pool, bias_pool):
    b_, t_, n_, c_ = x.shape
    d_ = node_embeddings.shape[1]
    k_, o_ = weights_pool.shape[1], weights_pool.shape[3]
    bt = b_ * t_
    assert (b_, t_, n_, c_, d_, k_, o_) == (B, T, N_NODES, DIM_IN, EMBED, CHEB_K, DIM_OUT)

    # --- wrapper-side layout glue only (no compute) ---
    # Xcat[m, i*BT + (b*T + t)] = x[b, t, m, i]
    xcat = jnp.transpose(x, (2, 3, 0, 1)).reshape(n_, c_ * bt)
    et = node_embeddings.T
    pool2 = jnp.concatenate(
        [weights_pool.reshape(d_, k_ * c_ * o_), bias_pool], axis=1)
    pcols = k_ * c_ * o_ + o_

    out2d = pl.pallas_call(
        _avwgcn_kernel,
        out_shape=jax.ShapeDtypeStruct((o_ * n_, bt), jnp.float32),
        grid=(1,),
        in_specs=[
            pl.BlockSpec((n_, c_ * bt), lambda i: (0, 0)),
            pl.BlockSpec((n_, d_), lambda i: (0, 0)),
            pl.BlockSpec((d_, n_), lambda i: (0, 0)),
            pl.BlockSpec((d_, pcols), lambda i: (0, 0)),
        ],
        out_specs=pl.BlockSpec((o_ * n_, bt), lambda i: (0, 0)),
        compiler_params=pltpu.CompilerParams(
            dimension_semantics=("arbitrary",)),
    )(xcat, node_embeddings, et, pool2)

    # (O*N, BT) -> (O, N, B, T) -> (B, T, N, O)
    return jnp.transpose(out2d.reshape(o_, n_, b_, t_), (2, 3, 1, 0))


def avwgcn_forward_reference(x, node_embeddings, weights_pool, bias_pool):
    # Plain-JAX mirror of the PyTorch forward.
    b_, t_, n_, _ = x.shape
    cheb_k = weights_pool.shape[1]
    a = jnp.maximum(node_embeddings @ node_embeddings.T, 0.0)
    supports = jax.nn.softmax(a, axis=1)
    support_set = [jnp.eye(n_, dtype=x.dtype), supports]
    for _ in range(2, cheb_k):
        support_set.append(2.0 * supports @ support_set[-1] - support_set[-2])
    s = jnp.stack(support_set, axis=0)                          # (K, N, N)
    weights = jnp.einsum('nd,dkio->nkio', node_embeddings, weights_pool)
    bias = node_embeddings @ bias_pool                          # (N, O)
    outs = []
    for t in range(t_):
        x_t = x[:, t]                                           # (B, N, C)
        x_g = jnp.einsum('knm,bmc->bknc', s, x_t)
        x_g = jnp.transpose(x_g, (0, 2, 1, 3))                  # (B, N, K, C)
        x_gc = jnp.einsum('bnki,nkio->bno', x_g, weights) + bias
        outs.append(x_gc[:, None])
    return jnp.concatenate(outs, axis=1)                        # (B, T, N, O)


if __name__ == "__main__":
    key = jax.random.PRNGKey(0)
    kx, ke, kw, kb = jax.random.split(key, 4)
    x = jax.random.normal(kx, (B, T, N_NODES, DIM_IN), jnp.float32)
    node_embeddings = 0.1 * jax.random.normal(ke, (N_NODES, EMBED), jnp.float32)
    weights_pool = 0.1 * jax.random.normal(
        kw, (EMBED, CHEB_K, DIM_IN, DIM_OUT), jnp.float32)
    bias_pool = 0.1 * jax.random.normal(kb, (EMBED, DIM_OUT), jnp.float32)

    out = avwgcn_forward_pallas(x, node_embeddings, weights_pool, bias_pool)
    out = jax.block_until_ready(out)

    ref = avwgcn_forward_reference(x, node_embeddings, weights_pool, bias_pool)
    assert out.shape == ref.shape == (B, T, N_NODES, DIM_OUT)
    max_err = float(jnp.max(jnp.abs(out - ref)))
    assert jnp.allclose(out, ref, atol=1e-3, rtol=1e-3), max_err
    print("KERNEL_OK")
</pallas_src>

<mosaic_0001>
module attributes {stable_mosaic.version = 11 : i64} {
  func.func @_avwgcn_kernel(%arg0: i32, %arg1: memref<16x64xf32, #tpu.memory_space<vmem>>, %arg2: memref<16x32xf32, #tpu.memory_space<vmem>>, %arg3: memref<32x16xf32, #tpu.memory_space<vmem>>, %arg4: memref<32x52xf32, #tpu.memory_space<vmem>>, %arg5: memref<64x16xf32, #tpu.memory_space<vmem>>) attributes {dimension_semantics = [#tpu.dimension_semantics<arbitrary>], iteration_bounds = array<i64: 1>, scalar_prefetch = 0 : i64, scratch_operands = 0 : i64, tpu.core_type = #tpu.core_type<tc>, window_params = [{pipeline_mode = #tpu.pipeline_mode<synchronous>, transform_indices = @transform_0, window_bounds = array<i64: 16, 64>}, {pipeline_mode = #tpu.pipeline_mode<synchronous>, transform_indices = @transform_1, window_bounds = array<i64: 16, 32>}, {pipeline_mode = #tpu.pipeline_mode<synchronous>, transform_indices = @transform_2, window_bounds = array<i64: 32, 16>}, {pipeline_mode = #tpu.pipeline_mode<synchronous>, transform_indices = @transform_3, window_bounds = array<i64: 32, 52>}, {pipeline_mode = #tpu.pipeline_mode<synchronous>, transform_indices = @transform_4, window_bounds = array<i64: 64, 16>}]} {
    %c0 = arith.constant 0 : index
    %c0_0 = arith.constant 0 : index
    %0 = vector.load %arg2[%c0, %c0_0] : memref<16x32xf32, #tpu.memory_space<vmem>>, vector<16x32xf32>
    %c0_1 = arith.constant 0 : index
    %c0_2 = arith.constant 0 : index
    %1 = vector.load %arg1[%c0_1, %c0_2] : memref<16x64xf32, #tpu.memory_space<vmem>>, vector<16x64xf32>
    %c0_3 = arith.constant 0 : index
    %c0_4 = arith.constant 0 : index
    %2 = vector.load %arg3[%c0_3, %c0_4] : memref<32x16xf32, #tpu.memory_space<vmem>>, vector<32x16xf32>
    %cst = arith.constant dense<0.000000e+00> : vector<16x16xf32>
    %3 = tpu.matmul %0, %2, %cst {dimension_numbers = #tpu.dot_dimension_numbers<[1], [0], [0], [1], [0, 0, 1, 1], [], []>} : vector<16x32xf32>, vector<32x16xf32>, vector<16x16xf32> -> vector<16x16xf32>
    %cst_5 = arith.constant 0.000000e+00 : f32
    %4 = vector.broadcast %cst_5 : f32 to vector<16x16xf32>
    %5 = arith.maximumf %3, %4 : vector<16x16xf32>
    %cst_6 = arith.constant dense<0xFF800000> : vector<16xf32>
    %6 = vector.multi_reduction <maximumf>, %5, %cst_6 [1] : vector<16x16xf32> to vector<16xf32>
    %7 = vector.shape_cast %6 : vector<16xf32> to vector<16x1xf32>
    %8 = vector.broadcast %7 : vector<16x1xf32> to vector<16x16xf32>
    %9 = arith.subf %5, %8 : vector<16x16xf32>
    %10 = math.exp %9 : vector<16x16xf32>
    %cst_7 = arith.constant dense<0.000000e+00> : vector<16xf32>
    %11 = vector.multi_reduction <add>, %10, %cst_7 [1] : vector<16x16xf32> to vector<16xf32>
    %12 = vector.shape_cast %11 : vector<16xf32> to vector<16x1xf32>
    %cst_8 = arith.constant 1.000000e+00 : f32
    %13 = vector.broadcast %cst_8 : f32 to vector<16x1xf32>
    %14 = arith.divf %13, %12 : vector<16x1xf32>
    %15 = vector.broadcast %14 : vector<16x1xf32> to vector<16x16xf32>
    %16 = arith.mulf %10, %15 : vector<16x16xf32>
    %17 = tpu.iota {dimensions = array<i32: 0>} : vector<16x16xi32>
    %18 = tpu.iota {dimensions = array<i32: 1>} : vector<16x16xi32>
    %19 = arith.cmpi eq, %17, %18 : vector<16x16xi32>
    %20 = arith.extui %19 : vector<16x16xi1> to vector<16x16xi32>
    %21 = arith.sitofp %20 : vector<16x16xi32> to vector<16x16xf32>
    %cst_9 = arith.constant dense<0.000000e+00> : vector<16x16xf32>
    %22 = tpu.matmul %16, %16, %cst_9 {dimension_numbers = #tpu.dot_dimension_numbers<[1], [0], [0], [1], [0, 0, 1, 1], [], []>} : vector<16x16xf32>, vector<16x16xf32>, vector<16x16xf32> -> vector<16x16xf32>
    %cst_10 = arith.constant 2.000000e+00 : f32
    %23 = vector.broadcast %cst_10 : f32 to vector<16x16xf32>
    %24 = arith.mulf %23, %22 : vector<16x16xf32>
    %25 = arith.subf %24, %21 : vector<16x16xf32>
    %cst_11 = arith.constant dense<0.000000e+00> : vector<16x64xf32>
    %26 = tpu.matmul %16, %1, %cst_11 {dimension_numbers = #tpu.dot_dimension_numbers<[1], [0], [0], [1], [0, 0, 1, 1], [], []>} : vector<16x16xf32>, vector<16x64xf32>, vector<16x64xf32> -> vector<16x64xf32>
    %cst_12 = arith.constant dense<0.000000e+00> : vector<16x64xf32>
    %27 = tpu.matmul %25, %1, %cst_12 {dimension_numbers = #tpu.dot_dimension_numbers<[1], [0], [0], [1], [0, 0, 1, 1], [], []>} : vector<16x16xf32>, vector<16x64xf32>, vector<16x64xf32> -> vector<16x64xf32>
    %c0_13 = arith.constant 0 : index
    %c0_14 = arith.constant 0 : index
    %28 = vector.load %arg4[%c0_13, %c0_14] : memref<32x52xf32, #tpu.memory_space<vmem>>, vector<32x52xf32>
    %cst_15 = arith.constant dense<0.000000e+00> : vector<16x52xf32>
    %29 = tpu.matmul %0, %28, %cst_15 {dimension_numbers = #tpu.dot_dimension_numbers<[1], [0], [0], [1], [0, 0, 1, 1], [], []>} : vector<16x32xf32>, vector<32x52xf32>, vector<16x52xf32> -> vector<16x52xf32>
    %30 = vector.extract_strided_slice %29 {offsets = [0, 0], sizes = [16, 48], strides = [1, 1]} : vector<16x52xf32> to vector<16x48xf32>
    %31 = vector.extract_strided_slice %29 {offsets = [0, 48], sizes = [16, 4], strides = [1, 1]} : vector<16x52xf32> to vector<16x4xf32>
    %cst_16 = arith.constant 0.000000e+00 : f32
    %32 = vector.broadcast %cst_16 : f32 to vector<16x16xf32>
    %cst_17 = arith.constant 0.000000e+00 : f32
    %33 = vector.broadcast %cst_17 : f32 to vector<16x16xf32>
    %cst_18 = arith.constant 0.000000e+00 : f32
    %34 = vector.broadcast %cst_18 : f32 to vector<16x16xf32>
    %cst_19 = arith.constant 0.000000e+00 : f32
    %35 = vector.broadcast %cst_19 : f32 to vector<16x16xf32>
    %36 = vector.extract_strided_slice %1 {offsets = [0, 0], sizes = [16, 16], strides = [1, 1]} : vector<16x64xf32> to vector<16x16xf32>
    %37 = vector.extract_strided_slice %30 {offsets = [0, 0], sizes = [16, 1], strides = [1, 1]} : vector<16x48xf32> to vector<16x1xf32>
    %38 = vector.broadcast %37 : vector<16x1xf32> to vector<16x16xf32>
    %39 = arith.mulf %36, %38 : vector<16x16xf32>
    %40 = arith.addf %32, %39 : vector<16x16xf32>
    %41 = vector.extract_strided_slice %30 {offsets = [0, 1], sizes = [16, 1], strides = [1, 1]} : vector<16x48xf32> to vector<16x1xf32>
    %42 = vector.broadcast %41 : vector<16x1xf32> to vector<16x16xf32>
    %43 = arith.mulf %36, %42 : vector<16x16xf32>
    %44 = arith.addf %33, %43 : vector<16x16xf32>
    %45 = vector.extract_strided_slice %30 {offsets = [0, 2], sizes = [16, 1], strides = [1, 1]} : vector<16x48xf32> to vector<16x1xf32>
    %46 = vector.broadcast %45 : vector<16x1xf32> to vector<16x16xf32>
    %47 = arith.mulf %36, %46 : vector<16x16xf32>
    %48 = arith.addf %34, %47 : vector<16x16xf32>
    %49 = vector.extract_strided_slice %30 {offsets = [0, 3], sizes = [16, 1], strides = [1, 1]} : vector<16x48xf32> to vector<16x1xf32>
    %50 = vector.broadcast %49 : vector<16x1xf32> to vector<16x16xf32>
    %51 = arith.mulf %36, %50 : vector<16x16xf32>
    %52 = arith.addf %35, %51 : vector<16x16xf32>
    %53 = vector.extract_strided_slice %1 {offsets = [0, 16], sizes = [16, 16], strides = [1, 1]} : vector<16x64xf32> to vector<16x16xf32>
    %54 = vector.extract_strided_slice %30 {offsets = [0, 4], sizes = [16, 1], strides = [1, 1]} : vector<16x48xf32> to vector<16x1xf32>
    %55 = vector.broadcast %54 : vector<16x1xf32> to vector<16x16xf32>
    %56 = arith.mulf %53, %55 : vector<16x16xf32>
    %57 = arith.addf %40, %56 : vector<16x16xf32>
    %58 = vector.extract_strided_slice %30 {offsets = [0, 5], sizes = [16, 1], strides = [1, 1]} : vector<16x48xf32> to vector<16x1xf32>
    %59 = vector.broadcast %58 : vector<16x1xf32> to vector<16x16xf32>
    %60 = arith.mulf %53, %59 : vector<16x16xf32>
    %61 = arith.addf %44, %60 : vector<16x16xf32>
    %62 = vector.extract_strided_slice %30 {offsets = [0, 6], sizes = [16, 1], strides = [1, 1]} : vector<16x48xf32> to vector<16x1xf32>
    %63 = vector.broadcast %62 : vector<16x1xf32> to vector<16x16xf32>
    %64 = arith.mulf %53, %63 : vector<16x16xf32>
    %65 = arith.addf %48, %64 : vector<16x16xf32>
    %66 = vector.extract_strided_slice %30 {offsets = [0, 7], sizes = [16, 1], strides = [1, 1]} : vector<16x48xf32> to vector<16x1xf32>
    %67 = vector.broadcast %66 : vector<16x1xf32> to vector<16x16xf32>
    %68 = arith.mulf %53, %67 : vector<16x16xf32>
    %69 = arith.addf %52, %68 : vector<16x16xf32>
    %70 = vector.extract_strided_slice %1 {offsets = [0, 32], sizes = [16, 16], strides = [1, 1]} : vector<16x64xf32> to vector<16x16xf32>
    %71 = vector.extract_strided_slice %30 {offsets = [0, 8], sizes = [16, 1], strides = [1, 1]} : vector<16x48xf32> to vector<16x1xf32>
    %72 = vector.broadcast %71 : vector<16x1xf32> to vector<16x16xf32>
    %73 = arith.mulf %70, %72 : vector<16x16xf32>
    %74 = arith.addf %57, %73 : vector<16x16xf32>
    %75 = vector.extract_strided_slice %30 {offsets = [0, 9], sizes = [16, 1], strides = [1, 1]} : vector<16x48xf32> to vector<16x1xf32>
    %76 = vector.broadcast %75 : vector<16x1xf32> to vector<16x16xf32>
    %77 = arith.mulf %70, %76 : vector<16x16xf32>
    %78 = arith.addf %61, %77 : vector<16x16xf32>
    %79 = vector.extract_strided_slice %30 {offsets = [0, 10], sizes = [16, 1], strides = [1, 1]} : vector<16x48xf32> to vector<16x1xf32>
    %80 = vector.broadcast %79 : vector<16x1xf32> to vector<16x16xf32>
    %81 = arith.mulf %70, %80 : vector<16x16xf32>
    %82 = arith.addf %65, %81 : vector<16x16xf32>
    %83 = vector.extract_strided_slice %30 {offsets = [0, 11], sizes = [16, 1], strides = [1, 1]} : vector<16x48xf32> to vector<16x1xf32>
    %84 = vector.broadcast %83 : vector<16x1xf32> to vector<16x16xf32>
    %85 = arith.mulf %70, %84 : vector<16x16xf32>
    %86 = arith.addf %69, %85 : vector<16x16xf32>
    %87 = vector.extract_strided_slice %1 {offsets = [0, 48], sizes = [16, 16], strides = [1, 1]} : vector<16x64xf32> to vector<16x16xf32>
    %88 = vector.extract_strided_slice %30 {offsets = [0, 12], sizes = [16, 1], strides = [1, 1]} : vector<16x48xf32> to vector<16x1xf32>
    %89 = vector.broadcast %88 : vector<16x1xf32> to vector<16x16xf32>
    %90 = arith.mulf %87, %89 : vector<16x16xf32>
    %91 = arith.addf %74, %90 : vector<16x16xf32>
    %92 = vector.extract_strided_slice %30 {offsets = [0, 13], sizes = [16, 1], strides = [1, 1]} : vector<16x48xf32> to vector<16x1xf32>
    %93 = vector.broadcast %92 : vector<16x1xf32> to vector<16x16xf32>
    %94 = arith.mulf %87, %93 : vector<16x16xf32>
    %95 = arith.addf %78, %94 : vector<16x16xf32>
    %96 = vector.extract_strided_slice %30 {offsets = [0, 14], sizes = [16, 1], strides = [1, 1]} : vector<16x48xf32> to vector<16x1xf32>
    %97 = vector.broadcast %96 : vector<16x1xf32> to vector<16x16xf32>
    %98 = arith.mulf %87, %97 : vector<16x16xf32>
    %99 = arith.addf %82, %98 : vector<16x16xf32>
    %100 = vector.extract_strided_slice %30 {offsets = [0, 15], sizes = [16, 1], strides = [1, 1]} : vector<16x48xf32> to vector<16x1xf32>
    %101 = vector.broadcast %100 : vector<16x1xf32> to vector<16x16xf32>
    %102 = arith.mulf %87, %101 : vector<16x16xf32>
    %103 = arith.addf %86, %102 : vector<16x16xf32>
    %104 = vector.extract_strided_slice %26 {offsets = [0, 0], sizes = [16, 16], strides = [1, 1]} : vector<16x64xf32> to vector<16x16xf32>
    %105 = vector.extract_strided_slice %30 {offsets = [0, 16], sizes = [16, 1], strides = [1, 1]} : vector<16x48xf32> to vector<16x1xf32>
    %106 = vector.broadcast %105 : vector<16x1xf32> to vector<16x16xf32>
    %107 = arith.mulf %104, %106 : vector<16x16xf32>
    %108 = arith.addf %91, %107 : vector<16x16xf32>
    %109 = vector.extract_strided_slice %30 {offsets = [0, 17], sizes = [16, 1], strides = [1, 1]} : vector<16x48xf32> to vector<16x1xf32>
    %110 = vector.broadcast %109 : vector<16x1xf32> to vector<16x16xf32>
    %111 = arith.mulf %104, %110 : vector<16x16xf32>
    %112 = arith.addf %95, %111 : vector<16x16xf32>
    %113 = vector.extract_strided_slice %30 {offsets = [0, 18], sizes = [16, 1], strides = [1, 1]} : vector<16x48xf32> to vector<16x1xf32>
    %114 = vector.broadcast %113 : vector<16x1xf32> to vector<16x16xf32>
    %115 = arith.mulf %104, %114 : vector<16x16xf32>
    %116 = arith.addf %99, %115 : vector<16x16xf32>
    %117 = vector.extract_strided_slice %30 {offsets = [0, 19], sizes = [16, 1], strides = [1, 1]} : vector<16x48xf32> to vector<16x1xf32>
    %118 = vector.broadcast %117 : vector<16x1xf32> to vector<16x16xf32>
    %119 = arith.mulf %104, %118 : vector<16x16xf32>
    %120 = arith.addf %103, %119 : vector<16x16xf32>
    %121 = vector.extract_strided_slice %26 {offsets = [0, 16], sizes = [16, 16], strides = [1, 1]} : vector<16x64xf32> to vector<16x16xf32>
    %122 = vector.extract_strided_slice %30 {offsets = [0, 20], sizes = [16, 1], strides = [1, 1]} : vector<16x48xf32> to vector<16x1xf32>
    %123 = vector.broadcast %122 : vector<16x1xf32> to vector<16x16xf32>
    %124 = arith.mulf %121, %123 : vector<16x16xf32>
    %125 = arith.addf %108, %124 : vector<16x16xf32>
    %126 = vector.extract_strided_slice %30 {offsets = [0, 21], sizes = [16, 1], strides = [1, 1]} : vector<16x48xf32> to vector<16x1xf32>
    %127 = vector.broadcast %126 : vector<16x1xf32> to vector<16x16xf32>
    %128 = arith.mulf %121, %127 : vector<16x16xf32>
    %129 = arith.addf %112, %128 : vector<16x16xf32>
    %130 = vector.extract_strided_slice %30 {offsets = [0, 22], sizes = [16, 1], strides = [1, 1]} : vector<16x48xf32> to vector<16x1xf32>
    %131 = vector.broadcast %130 : vector<16x1xf32> to vector<16x16xf32>
    %132 = arith.mulf %121, %131 : vector<16x16xf32>
    %133 = arith.addf %116, %132 : vector<16x16xf32>
    %134 = vector.extract_strided_slice %30 {offsets = [0, 23], sizes = [16, 1], strides = [1, 1]} : vector<16x48xf32> to vector<16x1xf32>
    %135 = vector.broadcast %134 : vector<16x1xf32> to vector<16x16xf32>
    %136 = arith.mulf %121, %135 : vector<16x16xf32>
    %137 = arith.addf %120, %136 : vector<16x16xf32>
    %138 = vector.extract_strided_slice %26 {offsets = [0, 32], sizes = [16, 16], strides = [1, 1]} : vector<16x64xf32> to vector<16x16xf32>
    %139 = vector.extract_strided_slice %30 {offsets = [0, 24], sizes = [16, 1], strides = [1, 1]} : vector<16x48xf32> to vector<16x1xf32>
    %140 = vector.broadcast %139 : vector<16x1xf32> to vector<16x16xf32>
    %141 = arith.mulf %138, %140 : vector<16x16xf32>
    %142 = arith.addf %125, %141 : vector<16x16xf32>
    %143 = vector.extract_strided_slice %30 {offsets = [0, 25], sizes = [16, 1], strides = [1, 1]} : vector<16x48xf32> to vector<16x1xf32>
    %144 = vector.broadcast %143 : vector<16x1xf32> to vector<16x16xf32>
    %145 = arith.mulf %138, %144 : vector<16x16xf32>
    %146 = arith.addf %129, %145 : vector<16x16xf32>
    %147 = vector.extract_strided_slice %30 {offsets = [0, 26], sizes = [16, 1], strides = [1, 1]} : vector<16x48xf32> to vector<16x1xf32>
    %148 = vector.broadcast %147 : vector<16x1xf32> to vector<16x16xf32>
    %149 = arith.mulf %138, %148 : vector<16x16xf32>
    %150 = arith.addf %133, %149 : vector<16x16xf32>
    %151 = vector.extract_strided_slice %30 {offsets = [0, 27], sizes = [16, 1], strides = [1, 1]} : vector<16x48xf32> to vector<16x1xf32>
    %152 = vector.broadcast %151 : vector<16x1xf32> to vector<16x16xf32>
    %153 = arith.mulf %138, %152 : vector<16x16xf32>
    %154 = arith.addf %137, %153 : vector<16x16xf32>
    %155 = vector.extract_strided_slice %26 {offsets = [0, 48], sizes = [16, 16], strides = [1, 1]} : vector<16x64xf32> to vector<16x16xf32>
    %156 = vector.extract_strided_slice %30 {offsets = [0, 28], sizes = [16, 1], strides = [1, 1]} : vector<16x48xf32> to vector<16x1xf32>
    %157 = vector.broadcast %156 : vector<16x1xf32> to vector<16x16xf32>
    %158 = arith.mulf %155, %157 : vector<16x16xf32>
    %159 = arith.addf %142, %158 : vector<16x16xf32>
    %160 = vector.extract_strided_slice %30 {offsets = [0, 29], sizes = [16, 1], strides = [1, 1]} : vector<16x48xf32> to vector<16x1xf32>
    %161 = vector.broadcast %160 : vector<16x1xf32> to vector<16x16xf32>
    %162 = arith.mulf %155, %161 : vector<16x16xf32>
    %163 = arith.addf %146, %162 : vector<16x16xf32>
    %164 = vector.extract_strided_slice %30 {offsets = [0, 30], sizes = [16, 1], strides = [1, 1]} : vector<16x48xf32> to vector<16x1xf32>
    %165 = vector.broadcast %164 : vector<16x1xf32> to vector<16x16xf32>
    %166 = arith.mulf %155, %165 : vector<16x16xf32>
    %167 = arith.addf %150, %166 : vector<16x16xf32>
    %168 = vector.extract_strided_slice %30 {offsets = [0, 31], sizes = [16, 1], strides = [1, 1]} : vector<16x48xf32> to vector<16x1xf32>
    %169 = vector.broadcast %168 : vector<16x1xf32> to vector<16x16xf32>
    %170 = arith.mulf %155, %169 : vector<16x16xf32>
    %171 = arith.addf %154, %170 : vector<16x16xf32>
    %172 = vector.extract_strided_slice %27 {offsets = [0, 0], sizes = [16, 16], strides = [1, 1]} : vector<16x64xf32> to vector<16x16xf32>
    %173 = vector.extract_strided_slice %30 {offsets = [0, 32], sizes = [16, 1], strides = [1, 1]} : vector<16x48xf32> to vector<16x1xf32>
    %174 = vector.broadcast %173 : vector<16x1xf32> to vector<16x16xf32>
    %175 = arith.mulf %172, %174 : vector<16x16xf32>
    %176 = arith.addf %159, %175 : vector<16x16xf32>
    %177 = vector.extract_strided_slice %30 {offsets = [0, 33], sizes = [16, 1], strides = [1, 1]} : vector<16x48xf32> to vector<16x1xf32>
    %178 = vector.broadcast %177 : vector<16x1xf32> to vector<16x16xf32>
    %179 = arith.mulf %172, %178 : vector<16x16xf32>
    %180 = arith.addf %163, %179 : vector<16x16xf32>
    %181 = vector.extract_strided_slice %30 {offsets = [0, 34], sizes = [16, 1], strides = [1, 1]} : vector<16x48xf32> to vector<16x1xf32>
    %182 = vector.broadcast %181 : vector<16x1xf32> to vector<16x16xf32>
    %183 = arith.mulf %172, %182 : vector<16x16xf32>
    %184 = arith.addf %167, %183 : vector<16x16xf32>
    %185 = vector.extract_strided_slice %30 {offsets = [0, 35], sizes = [16, 1], strides = [1, 1]} : vector<16x48xf32> to vector<16x1xf32>
    %186 = vector.broadcast %185 : vector<16x1xf32> to vector<16x16xf32>
    %187 = arith.mulf %172, %186 : vector<16x16xf32>
    %188 = arith.addf %171, %187 : vector<16x16xf32>
    %189 = vector.extract_strided_slice %27 {offsets = [0, 16], sizes = [16, 16], strides = [1, 1]} : vector<16x64xf32> to vector<16x16xf32>
    %190 = vector.extract_strided_slice %30 {offsets = [0, 36], sizes = [16, 1], strides = [1, 1]} : vector<16x48xf32> to vector<16x1xf32>
    %191 = vector.broadcast %190 : vector<16x1xf32> to vector<16x16xf32>
    %192 = arith.mulf %189, %191 : vector<16x16xf32>
    %193 = arith.addf %176, %192 : vector<16x16xf32>
    %194 = vector.extract_strided_slice %30 {offsets = [0, 37], sizes = [16, 1], strides = [1, 1]} : vector<16x48xf32> to vector<16x1xf32>
    %195 = vector.broadcast %194 : vector<16x1xf32> to vector<16x16xf32>
    %196 = arith.mulf %189, %195 : vector<16x16xf32>
    %197 = arith.addf %180, %196 : vector<16x16xf32>
    %198 = vector.extract_strided_slice %30 {offsets = [0, 38], sizes = [16, 1], strides = [1, 1]} : vector<16x48xf32> to vector<16x1xf32>
    %199 = vector.broadcast %198 : vector<16x1xf32> to vector<16x16xf32>
    %200 = arith.mulf %189, %199 : vector<16x16xf32>
    %201 = arith.addf %184, %200 : vector<16x16xf32>
    %202 = vector.extract_strided_slice %30 {offsets = [0, 39], sizes = [16, 1], strides = [1, 1]} : vector<16x48xf32> to vector<16x1xf32>
    %203 = vector.broadcast %202 : vector<16x1xf32> to vector<16x16xf32>
    %204 = arith.mulf %189, %203 : vector<16x16xf32>
    %205 = arith.addf %188, %204 : vector<16x16xf32>
    %206 = vector.extract_strided_slice %27 {offsets = [0, 32], sizes = [16, 16], strides = [1, 1]} : vector<16x64xf32> to vector<16x16xf32>
    %207 = vector.extract_strided_slice %30 {offsets = [0, 40], sizes = [16, 1], strides = [1, 1]} : vector<16x48xf32> to vector<16x1xf32>
    %208 = vector.broadcast %207 : vector<16x1xf32> to vector<16x16xf32>
    %209 = arith.mulf %206, %208 : vector<16x16xf32>
    %210 = arith.addf %193, %209 : vector<16x16xf32>
    %211 = vector.extract_strided_slice %30 {offsets = [0, 41], sizes = [16, 1], strides = [1, 1]} : vector<16x48xf32> to vector<16x1xf32>
    %212 = vector.broadcast %211 : vector<16x1xf32> to vector<16x16xf32>
    %213 = arith.mulf %206, %212 : vector<16x16xf32>
    %214 = arith.addf %197, %213 : vector<16x16xf32>
    %215 = vector.extract_strided_slice %30 {offsets = [0, 42], sizes = [16, 1], strides = [1, 1]} : vector<16x48xf32> to vector<16x1xf32>
    %216 = vector.broadcast %215 : vector<16x1xf32> to vector<16x16xf32>
    %217 = arith.mulf %206, %216 : vector<16x16xf32>
    %218 = arith.addf %201, %217 : vector<16x16xf32>
    %219 = vector.extract_strided_slice %30 {offsets = [0, 43], sizes = [16, 1], strides = [1, 1]} : vector<16x48xf32> to vector<16x1xf32>
    %220 = vector.broadcast %219 : vector<16x1xf32> to vector<16x16xf32>
    %221 = arith.mulf %206, %220 : vector<16x16xf32>
    %222 = arith.addf %205, %221 : vector<16x16xf32>
    %223 = vector.extract_strided_slice %27 {offsets = [0, 48], sizes = [16, 16], strides = [1, 1]} : vector<16x64xf32> to vector<16x16xf32>
    %224 = vector.extract_strided_slice %30 {offsets = [0, 44], sizes = [16, 1], strides = [1, 1]} : vector<16x48xf32> to vector<16x1xf32>
    %225 = vector.broadcast %224 : vector<16x1xf32> to vector<16x16xf32>
    %226 = arith.mulf %223, %225 : vector<16x16xf32>
    %227 = arith.addf %210, %226 : vector<16x16xf32>
    %228 = vector.extract_strided_slice %30 {offsets = [0, 45], sizes = [16, 1], strides = [1, 1]} : vector<16x48xf32> to vector<16x1xf32>
    %229 = vector.broadcast %228 : vector<16x1xf32> to vector<16x16xf32>
    %230 = arith.mulf %223, %229 : vector<16x16xf32>
    %231 = arith.addf %214, %230 : vector<16x16xf32>
    %232 = vector.extract_strided_slice %30 {offsets = [0, 46], sizes = [16, 1], strides = [1, 1]} : vector<16x48xf32> to vector<16x1xf32>
    %233 = vector.broadcast %232 : vector<16x1xf32> to vector<16x16xf32>
    %234 = arith.mulf %223, %233 : vector<16x16xf32>
    %235 = arith.addf %218, %234 : vector<16x16xf32>
    %236 = vector.extract_strided_slice %30 {offsets = [0, 47], sizes = [16, 1], strides = [1, 1]} : vector<16x48xf32> to vector<16x1xf32>
    %237 = vector.broadcast %236 : vector<16x1xf32> to vector<16x16xf32>
    %238 = arith.mulf %223, %237 : vector<16x16xf32>
    %239 = arith.addf %222, %238 : vector<16x16xf32>
    %240 = vector.extract_strided_slice %31 {offsets = [0, 0], sizes = [16, 1], strides = [1, 1]} : vector<16x4xf32> to vector<16x1xf32>
    %241 = vector.broadcast %240 : vector<16x1xf32> to vector<16x16xf32>
    %242 = arith.addf %227, %241 : vector<16x16xf32>
    %243 = vector.extract_strided_slice %31 {offsets = [0, 1], sizes = [16, 1], strides = [1, 1]} : vector<16x4xf32> to vector<16x1xf32>
    %244 = vector.broadcast %243 : vector<16x1xf32> to vector<16x16xf32>
    %245 = arith.addf %231, %244 : vector<16x16xf32>
    %246 = vector.extract_strided_slice %31 {offsets = [0, 2], sizes = [16, 1], strides = [1, 1]} : vector<16x4xf32> to vector<16x1xf32>
    %247 = vector.broadcast %246 : vector<16x1xf32> to vector<16x16xf32>
    %248 = arith.addf %235, %247 : vector<16x16xf32>
    %249 = vector.extract_strided_slice %31 {offsets = [0, 3], sizes = [16, 1], strides = [1, 1]} : vector<16x4xf32> to vector<16x1xf32>
    %250 = vector.broadcast %249 : vector<16x1xf32> to vector<16x16xf32>
    %251 = arith.addf %239, %250 : vector<16x16xf32>
    %252 = tpu.concatenate %242, %245, %248, %251 in 0 : vector<16x16xf32>, vector<16x16xf32>, vector<16x16xf32>, vector<16x16xf32> -> vector<64x16xf32>
    %c0_20 = arith.constant 0 : index
    %c0_21 = arith.constant 0 : index
    %253 = vector.load %arg5[%c0_20, %c0_21] : memref<64x16xf32, #tpu.memory_space<vmem>>, vector<64x16xf32>
    tpu.vector_store %arg5[%c0_20, %c0_21], %252 {strides = array<i32>} : memref<64x16xf32, #tpu.memory_space<vmem>>, vector<64x16xf32>,
    return
  }
  func.func @transform_0(%arg0: i32) -> (i32, i32) {
    %c0_i32 = arith.constant 0 : i32
    %c0_i32_0 = arith.constant 0 : i32
    %c0_i32_1 = arith.constant 0 : i32
    return %c0_i32, %c0_i32_0 : i32, i32
  }
  func.func @transform_1(%arg0: i32) -> (i32, i32) {
    %c0_i32 = arith.constant 0 : i32
    %c0_i32_0 = arith.constant 0 : i32
    %c0_i32_1 = arith.constant 0 : i32
    return %c0_i32, %c0_i32_0 : i32, i32
  }
  func.func @transform_2(%arg0: i32) -> (i32, i32) {
    %c0_i32 = arith.constant 0 : i32
    %c0_i32_0 = arith.constant 0 : i32
    %c0_i32_1 = arith.constant 0 : i32
    return %c0_i32, %c0_i32_0 : i32, i32
  }
  func.func @transform_3(%arg0: i32) -> (i32, i32) {
    %c0_i32 = arith.constant 0 : i32
    %c0_i32_0 = arith.constant 0 : i32
    %c0_i32_1 = arith.constant 0 : i32
    return %c0_i32, %c0_i32_0 : i32, i32
  }
  func.func @transform_4(%arg0: i32) -> (i32, i32) {
    %c0_i32 = arith.constant 0 : i32
    %c0_i32_0 = arith.constant 0 : i32
    %c0_i32_1 = arith.constant 0 : i32
    return %c0_i32, %c0_i32_0 : i32, i32
  }
}

</mosaic_0001>

<bundles_post_ra>
// kernel: tpu_custom_call.1
= control target key start
LH: loop header
LB: loop body
LE: loop exit
PB: predicated region body
PF: predicated region fallthrough
CT: control target
= control target key end

     0   :  { %9 = vsyncpa [#allocation3], 0  ;;  %s1703_s15 = smov [#allocation2]   ;;  %s2586_s0 = inlined_call_operand.vmem [shape: f32[16,64], index: 0, kind: input, shape index: {}]   ;;  %s2587_s1 = inlined_call_operand.hbm [shape: f32[16,32], index: 1, kind: input, shape index: {}]   ;;  %s2588_s2 = inlined_call_operand.vmem [shape: f32[32,16], index: 2, kind: input, shape index: {}]   ;;  %s2589_s3 = inlined_call_operand.vmem [shape: f32[32,52], index: 3, kind: input, shape index: {}]   ;;  %s2590_s4 = inlined_call_operand.vmem [shape: f32[64,16], index: 4, kind: output, shape index: {}]  }
   0x1   :  { %s17_s16 = sshll.u32 %s1703_s15, 4  ;;  %s1679_s19 = scalar_lea.hbm %s2587_s1, 256  ;;  %s18_s16 = int_to_ptr.vmem [resolvable:$true] %s17_s16 }
   0x2   :  { %p1680_p0 = scmp.ne.s32.totalorder %s2587_s1, %s1679_s19  ;;  %p1683_p1 = scmp.lt.u32.totalorder %s1679_s19, %s2587_s1 }
   0x4   :  { %p1685_p2 = pnand %p1683_p1, %p1680_p0 }
   0x6   :  { %1688 = shalt.err (!%p1685_p2)
}
   0x7   :  { %s1689_s24 = scalar_lea.vmem %s18_s16, 256  ;;  %p1694_p4 = scmp.lt.s32.totalorder %s18_s16, %s18_s16 }
   0x8   :  { %p1690_p3 = scmp.ne.s32.totalorder %s18_s16, %s1689_s24  ;;  %p1695_p5 = scmp.lt.s32.totalorder %s1689_s24, %s1689_s24 }
   0xa   :  { %p1696_p6 = por %p1695_p5, %p1694_p4 }
   0xc   :  { %p1697_p7 = pnand %p1696_p6, %p1690_p3 }
   0xe   :  { %1700 = shalt.err (!%p1697_p7)
}
   0xf   :  { %s1704_s25 = smov 128   ;;  %s1705_s26 = smov 8  }
  0x10   :  { %23 = dma.hbm_to_vmem [thread:$0]  %s2587_s1, 256, %s18_s16, [#allocation3], %s1704_s25, %s1704_s25, %s1705_s26  }
  0x11   :  { %1701 = dma.done.wait [#allocation3], 256  }
  0x12   :  { %1702 = vsyncadd [#allocation3], 4294967040  ;;  %vm39_vm0 = vcmask 261120   ;;  %v35_v0 = vld [vmem:[%s2588_s2] sm:$0xff]  ;;  %v36_v1 = vld [vmem:[%s2588_s2 + $0x8] sm:$0xff]  ;;  %vm123_vm1 = vcmask 130048   ;;  %v148_v42 = vlaneseq }
  0x13   :  { %v37_v2 = vld [vmem:[%s2588_s2 + $0x10] sm:$0xff]  ;;  %v1477_v3 = vpack.c.bf16 %v36_v1, %v35_v0  ;;  %v38_v4 = vld [vmem:[%s2588_s2 + $0x18] sm:$0xff]  ;;  %v31_v5 = vld [vmem:[#allocation2] sm:$0xff]  ;;  %v1706_v40 = vmov 4   ;;  %v1707_v41 = vmov 0   ;;  %v1708_v48 = vmov 0.0  }
  0x14   :  { %v1481_v6 = vpack.c.bf16 %v38_v4, %v37_v2  ;;  %1442 = vmatprep.mubr.msk.f32.mxu0 %vm39_vm0, %v31_v5  ;;  %v32_v7 = vld [vmem:[#allocation2 + $0x8] sm:$0xff]  ;;  %v1820_v24 = vld [vmem:[%s2586_s0] sm:$0xff]  ;;  %v402_v37 = vld [vmem:[%s2589_s3 + $0x10] sm:$0xff]  ;;  %1568 = vset.pattern.permute.xlu0 %v1706_v40  ;;  %v149_v43 = vshrl.u32 %v148_v42, 7  ;;  %v152_v44 = vand.u32 127, %v148_v42  ;;  %v1709_v59 = vmov 6  }
  0x15   :  { %1478 = vmatprep.subr.bf16.mxu0 %v1477_v3  ;;  %v1825_v25 = vld [vmem:[%s2586_s0 + $0x8] sm:$0xff]  ;;  %v400_v34 = vld [vmem:[%s2589_s3] sm:$0xff]  ;;  %v403_v38 = vld [vmem:[%s2589_s3 + $0x18] sm:$0xff]  ;;  %1564 = vset.pattern.permute.xlu1 %v1707_v41  ;;  %v1710_v60 = vmov 1   ;;  %v1711_v61 = vmov 8   ;;  %v1712_v62 = vmov 2  }
  0x16   :  { %1480 = vmatpush3.bf16.msra.mxu0 %v1477_v3  ;;  %v1489_v26 = vpack.c.bf16 %v1825_v25, %v1820_v24  ;;  %v401_v35 = vld [vmem:[%s2589_s3 + $0x8] sm:$0xff]  ;;  %v1501_v39 = vpack.c.bf16 %v403_v38, %v402_v37  ;;  %v150_v45 = vadd.s32 8, %v149_v43  ;;  %vm153_vm2 = vcmp.eq.s32.totalorder %v149_v43, %v152_v44  ;;  %s1759_s3 = smov 112   ;;  %s1760_s21 = smov 96  }
  0x17   :  { %1482 = vmatprep.subr.bf16.mxu0 %v1481_v6  ;;  %v1497_v36 = vpack.c.bf16 %v401_v35, %v400_v34  ;;  %v1400_v49 = vsel %vm153_vm2, 1.0, %v1708_v48  ;;  %v1713_v63 = vmov 10   ;;  %v1714_v0 = vmov 3   ;;  %s1761_s22 = smov 80  }
  0x18   :  { %vm154_vm3 = vcmp.eq.s32.totalorder %v150_v45, %v152_v44  ;;  %v1715_v1 = vmov 12   ;;  %v1716_v2 = vmov 5   ;;  %v1717_v3 = vmov 14  }
  0x19   :  { %v1401_v51 = vsel %vm154_vm3, 1.0, %v1708_v48  ;;  %v1718_v4 = vmov 7   ;;  %v1746_v34 = vmov 33   ;;  %v1747_v35 = vmov 34  }
  0x1a   :  { %1484 = vmatpush3.bf16.msra.mxu0 %v1481_v6  ;;  %v1720_v6 = vmov 9   ;;  %v1749_v37 = vmov 37   ;;  %v1750_v38 = vmov 39   ;;  %v1753_v44 = vmov 43  }
  0x1b   :  { %1494 = vmatprep.subr.bf16.mxu0 %v1489_v26 }
  0x1d   :  { %1443 = vmatmul.mubr.msk.f32.vlgmr.msra.gmra.mrb[0].mxu0 %vm39_vm0, %v32_v7 }
  0x1e   :  { %1496 = vmatpush3.bf16.msra.mxu0 %v1489_v26 }
  0xf0   :  { %v1444_v8 = vpop.f32.mrb[0].mxu0 }
  0xf1   :  { %v112_v9 = vpop.f32.mrb[1].mxu0  ;;  %v122_v11 = vmax.f32 %v1444_v8, 0.0  ;;  %v1722_v8 = vmov 11  }
  0xf2   :  { %v121_v10 = vmax.f32 %v112_v9, 0.0  ;;  %v1723_v9 = vmov 22  }
  0xf3   :  { %v127_v13 = vsel %vm123_vm1, %v122_v11, -inf }
  0xf4   :  { %v124_v12 = vsel %vm123_vm1, %v121_v10, -inf }
  0xf5   :  { %125 = vmax.xlane.f32.xlu0 %v124_v12  ;;  %v1726_v12 = vmov 15  }
  0xf9   :  { %128 = vmax.xlane.f32.xlu0 %v127_v13  ;;  %v1727_v13 = vmov 26  }
 0x182   :  { %v126_v14 = vpop.xlane.xlu0 %125 }
 0x183   :  { %v130_v15 = vsub.f32 %v121_v10, %v126_v14  ;;  %v1724_v10 = vmov 13   ;;  %v1728_v14 = vmov 17  }
 0x185   :  { %v132_v16 = vmul.f32 1.442695, %v130_v15  ;;  %v1729_v15 = vmov 28  }
 0x186   :  { %v129_v17 = vpop.xlane.xlu0 %128 }
 0x187   :  { %1669 = vpow2.f32 %v132_v16  ;;  %v131_v18 = vsub.f32 %v122_v11, %v129_v17  ;;  %v1725_v11 = vmov 24   ;;  %v1730_v16 = vmov 18  }
 0x188   :  { %v1731_v17 = vmov 30  }
 0x189   :  { %v134_v19 = vmul.f32 1.442695, %v131_v18  ;;  %v1732_v18 = vmov 20  }
 0x18b   :  { %1671 = vpow2.f32 %v134_v19  ;;  %v1733_v19 = vmov 32  }
 0x191   :  { %v1670_v20 = vpop.eup %1669 }
 0x192   :  { %v136_v21 = vsel %vm123_vm1, %v1670_v20, 0.0 }
 0x193   :  { %137 = vadd.xlane.f32.xlu1 %v136_v21  ;;  %v1735_v21 = vmov 35  }
 0x195   :  { %v1672_v22 = vpop.eup %1671 }
 0x196   :  { %v139_v23 = vsel %vm123_vm1, %v1672_v22, 0.0 }
 0x197   :  { %140 = vadd.xlane.f32.xlu1 %v139_v23  ;;  %v1737_v23 = vmov 38  }
 0x220   :  { %v138_v27 = vpop.xlane.xlu1 %137 }
 0x221   :  { %1673 = vrcp.f32 %v138_v27  ;;  %v1739_v27 = vmov 41  }
 0x224   :  { %v141_v28 = vpop.xlane.xlu1 %140 }
 0x225   :  { %1675 = vrcp.f32 %v141_v28  ;;  %v1740_v28 = vmov 27  }
 0x22b   :  { %v1674_v29 = vpop.eup %1673 }
 0x22c   :  { %v146_v30 = vmul.f32 %v1674_v29, %v1670_v20  ;;  %v1734_v20 = vmov 21   ;;  %v1741_v29 = vmov 44  }
 0x22e   :  { %1449 = vmatprep.mubr.msk.f32.mxu1 %vm123_vm1, %v146_v30 }
 0x22f   :  { %v1676_v31 = vpop.eup %1675 }
 0x230   :  { %v147_v32 = vmul.f32 %v1676_v31, %v1672_v22  ;;  %v1736_v22 = vmov 23   ;;  %v2594_v31 = vmov 47  }
 0x232   :  { %v1485_v33 = vpack.c.bf16 %v147_v32, %v146_v30 }
 0x234   :  { %1486 = vmatprep.subr.bf16.mxu1 %v1485_v33 }
 0x235   :  { %1488 = vmatpush3.bf16.msra.mxu1 %v1485_v33  ;;  %v2592_v33 = vmov 50  }
 0x236   :  { %1490 = vmatprep.subr.bf16.mxu1 %v1489_v26 }
 0x238   :  { %1450 = vmatmul.mubr.msk.f32.vlgmr.msra.gmra.mrb[0].mxu1 %vm123_vm1, %v147_v32 }
 0x239   :  { %1492 = vmatpush3.bf16.msra.mxu1 %v1489_v26  ;;  %1456 = vmatprep.mubr.msk.f32.mxu1 %vm123_vm1, %v146_v30  ;;  %v1738_v26 = vmov 25   ;;  %v1742_v30 = vmov 29  }
 0x23a   :  { %1498 = vmatprep.subr.bf16.mxu1 %v1497_v36 }
 0x23c   :  { %1457 = vmatmul.mubr.msk.f32.vlgmr.msra.gmra.mrb[2].mxu1 %vm123_vm1, %v147_v32  ;;  %v1744_v32 = vmov 31  }
 0x23d   :  { %1500 = vmatpush3.bf16.msra.mxu1 %v1497_v36  ;;  %1474 = vmatprep.mubr.msk.f32.mxu1 %vm39_vm0, %v31_v5  ;;  %v1719_v5 = vmov 16   ;;  %v1748_v36 = vmov 36  }
 0x23e   :  { %1502 = vmatprep.subr.bf16.mxu1 %v1501_v39 }
 0x241   :  { %1504 = vmatpush3.bf16.msra.mxu1 %v1501_v39  ;;  %v1751_v39 = vmov 40  }
 0x244   :  { %1475 = vmatmul.mubr.msk.f32.vlgmr.msra.gmra.mrb[4].mxu1 %vm39_vm0, %v32_v7  ;;  %v1721_v7 = vmov 19  }
 0x30b   :  { %v1451_v46 = vpop.f32.mrb[0].mxu1 }
 0x30c   :  { %v241_v47 = vmul.f32 2.0, %v1451_v46  ;;  %v231_v50 = vpop.f32.mrb[1].mxu1 }
 0x30d   :  { %v240_v52 = vmul.f32 2.0, %v231_v50  ;;  %v1755_v50 = vmov 46  }
 0x30e   :  { %v243_v55 = vsub.f32 %v241_v47, %v1401_v51  ;;  %v1754_v47 = vmov 45  }
 0x30f   :  { %v242_v53 = vsub.f32 %v240_v52, %v1400_v49  ;;  %v1849_v54 = vpop.f32.mrb[2].mxu1 }
 0x310   :  { %v1851_v56 = vpop.f32.mrb[3].mxu1 }
 0x311   :  { %1463 = vmatprep.mubr.msk.f32.mxu0 %vm123_vm1, %v242_v53  ;;  %v2593_v53 = vmov 48  }
 0x312   :  { %1464 = vmatmul.mubr.msk.f32.vlgmr.msra.gmra.mrb[2].mxu0 %vm123_vm1, %v243_v55 }
 0x317   :  { %v1855_v57 = vpop.f32.mrb[4].mxu1 }
 0x318   :  { %534 = vperm.xlu0 %1568, %v1855_v57   ;;  %486 = vperm.xlu1 %1564, %v1855_v57   ;;  %v1859_v58 = vpop.f32.mrb[5].mxu1 }
 0x31c   :  { %1570 = vset.pattern.permute.xlu0 %v1709_v59  ;;  %1565 = vset.pattern.permute.xlu1 %v1710_v60 }
 0x31d   :  { %574 = vperm.xlu0 %1570, %v1855_v57   ;;  %498 = vperm.xlu1 %1565, %v1855_v57  }
 0x321   :  { %1572 = vset.pattern.permute.xlu0 %v1711_v61  ;;  %1566 = vset.pattern.permute.xlu1 %v1712_v62 }
 0x322   :  { %614 = vperm.xlu0 %1572, %v1855_v57   ;;  %510 = vperm.xlu1 %1566, %v1855_v57  }
 0x326   :  { %1574 = vset.pattern.permute.xlu0 %v1713_v63  ;;  %1567 = vset.pattern.permute.xlu1 %v1714_v0 }
 0x327   :  { %654 = vperm.xlu0 %1574, %v1855_v57   ;;  %522 = vperm.xlu1 %1567, %v1855_v57  }
 0x32b   :  { %1576 = vset.pattern.permute.xlu0 %v1715_v1  ;;  %1569 = vset.pattern.permute.xlu1 %v1716_v2 }
 0x32c   :  { %694 = vperm.xlu0 %1576, %v1855_v57   ;;  %554 = vperm.xlu1 %1569, %v1855_v57  }
 0x330   :  { %1578 = vset.pattern.permute.xlu0 %v1717_v3  ;;  %1571 = vset.pattern.permute.xlu1 %v1718_v4 }
 0x331   :  { %734 = vperm.xlu0 %1578, %v1855_v57   ;;  %594 = vperm.xlu1 %1571, %v1855_v57  }
 0x335   :  { %1580 = vset.pattern.permute.xlu0 %v1719_v5  ;;  %1573 = vset.pattern.permute.xlu1 %v1720_v6 }
 0x336   :  { %774 = vperm.xlu0 %1580, %v1855_v57   ;;  %634 = vperm.xlu1 %1573, %v1855_v57  }
 0x33a   :  { %1583 = vset.pattern.permute.xlu0 %v1721_v7  ;;  %1575 = vset.pattern.permute.xlu1 %v1722_v8 }
 0x33b   :  { %810 = vperm.xlu0 %1583, %v1855_v57   ;;  %674 = vperm.xlu1 %1575, %v1855_v57  }
 0x33f   :  { %1586 = vset.pattern.permute.xlu0 %v1723_v9  ;;  %1577 = vset.pattern.permute.xlu1 %v1724_v10 }
 0x340   :  { %862 = vperm.xlu0 %1586, %v1855_v57   ;;  %714 = vperm.xlu1 %1577, %v1855_v57  }
 0x344   :  { %1588 = vset.pattern.permute.xlu0 %v1725_v11  ;;  %1579 = vset.pattern.permute.xlu1 %v1726_v12 }
 0x345   :  { %902 = vperm.xlu0 %1588, %v1855_v57   ;;  %754 = vperm.xlu1 %1579, %v1855_v57  }
 0x349   :  { %1590 = vset.pattern.permute.xlu0 %v1727_v13  ;;  %1581 = vset.pattern.permute.xlu1 %v1728_v14 }
 0x34a   :  { %942 = vperm.xlu0 %1590, %v1855_v57   ;;  %786 = vperm.xlu1 %1581, %v1855_v57  }
 0x34e   :  { %1592 = vset.pattern.permute.xlu0 %v1729_v15  ;;  %1582 = vset.pattern.permute.xlu1 %v1730_v16 }
 0x34f   :  { %982 = vperm.xlu0 %1592, %v1855_v57   ;;  %798 = vperm.xlu1 %1582, %v1855_v57  }
 0x353   :  { %1594 = vset.pattern.permute.xlu0 %v1731_v17  ;;  %1584 = vset.pattern.permute.xlu1 %v1732_v18 }
 0x354   :  { %1022 = vperm.xlu0 %1594, %v1855_v57   ;;  %822 = vperm.xlu1 %1584, %v1855_v57  }
 0x358   :  { %1596 = vset.pattern.permute.xlu0 %v1733_v19  ;;  %1585 = vset.pattern.permute.xlu1 %v1734_v20 }
 0x359   :  { %1062 = vperm.xlu0 %1596, %v1855_v57   ;;  %842 = vperm.xlu1 %1585, %v1855_v57  }
 0x35d   :  { %1599 = vset.pattern.permute.xlu0 %v1735_v21  ;;  %1587 = vset.pattern.permute.xlu1 %v1736_v22 }
 0x35e   :  { %1098 = vperm.xlu0 %1599, %v1855_v57   ;;  %882 = vperm.xlu1 %1587, %v1855_v57  }
 0x362   :  { %1602 = vset.pattern.permute.xlu0 %v1737_v23  ;;  %1589 = vset.pattern.permute.xlu1 %v1738_v26 }
 0x363   :  { %1150 = vperm.xlu0 %1602, %v1855_v57   ;;  %922 = vperm.xlu1 %1589, %v1855_v57  }
 0x367   :  { %1605 = vset.pattern.permute.xlu0 %v1739_v27  ;;  %1591 = vset.pattern.permute.xlu1 %v1740_v28 }
 0x368   :  { %1210 = vperm.xlu0 %1605, %v1855_v57   ;;  %962 = vperm.xlu1 %1591, %v1855_v57  }
 0x36c   :  { %1608 = vset.pattern.permute.xlu0 %v1741_v29  ;;  %1593 = vset.pattern.permute.xlu1 %v1742_v30 }
 0x36d   :  { %1270 = vperm.xlu0 %1608, %v1855_v57   ;;  %1002 = vperm.xlu1 %1593, %v1855_v57  }
 0x371   :  { %1611 = vset.pattern.permute.xlu0 %v2594_v31  ;;  %1595 = vset.pattern.permute.xlu1 %v1744_v32 }
 0x372   :  { %1330 = vperm.xlu0 %1611, %v1855_v57   ;;  %1042 = vperm.xlu1 %1595, %v1855_v57  }
 0x376   :  { %1614 = vset.pattern.permute.xlu0 %v2592_v33  ;;  %1597 = vset.pattern.permute.xlu1 %v1746_v34 }
 0x377   :  { %1370 = vperm.xlu0 %1614, %v1855_v57   ;;  %1074 = vperm.xlu1 %1597, %v1855_v57  }
 0x37b   :  { %1616 = vset.pattern.permute.xlu0 %v1707_v41  ;;  %1598 = vset.pattern.permute.xlu1 %v1747_v35  ;;  %v1752_v41 = vmov 42  }
 0x37c   :  { %1086 = vperm.xlu1 %1598, %v1855_v57   ;;  %481 = vperm.xlu0 %1616, %v1859_v58  }
 0x380   :  { %1600 = vset.pattern.permute.xlu1 %v1748_v36  ;;  %1621 = vset.pattern.permute.xlu0 %v1716_v2 }
 0x381   :  { %1110 = vperm.xlu1 %1600, %v1855_v57   ;;  %550 = vperm.xlu0 %1621, %v1859_v58  }
 0x385   :  { %1601 = vset.pattern.permute.xlu1 %v1749_v37  ;;  %1623 = vset.pattern.permute.xlu0 %v1718_v4  ;;  %v1757_v4 = vmov 49  }
 0x386   :  { %1130 = vperm.xlu1 %1601, %v1855_v57   ;;  %590 = vperm.xlu0 %1623, %v1859_v58  }
 0x38a   :  { %1603 = vset.pattern.permute.xlu1 %v1750_v38  ;;  %1625 = vset.pattern.permute.xlu0 %v1720_v6 }
 0x38b   :  { %1170 = vperm.xlu1 %1603, %v1855_v57   ;;  %630 = vperm.xlu0 %1625, %v1859_v58  }
 0x38f   :  { %1604 = vset.pattern.permute.xlu1 %v1751_v39  ;;  %1627 = vset.pattern.permute.xlu0 %v1722_v8 }
 0x390   :  { %1190 = vperm.xlu1 %1604, %v1855_v57   ;;  %670 = vperm.xlu0 %1627, %v1859_v58  }
 0x394   :  { %1606 = vset.pattern.permute.xlu1 %v1752_v41  ;;  %1629 = vset.pattern.permute.xlu0 %v1724_v10  ;;  %v2591_v10 = vmov 51  }
 0x395   :  { %1230 = vperm.xlu1 %1606, %v1855_v57   ;;  %710 = vperm.xlu0 %1629, %v1859_v58  }
 0x397   :  { %v1961_v42 = vpop.permute.xlu0 %534  ;;  %v1963_v43 = vpop.permute.xlu1 %486 }
 0x399   :  { %1607 = vset.pattern.permute.xlu1 %v1753_v44  ;;  %1631 = vset.pattern.permute.xlu0 %v1726_v12 }
 0x39a   :  { %1250 = vperm.xlu1 %1607, %v1855_v57   ;;  %750 = vperm.xlu0 %1631, %v1859_v58  }
 0x39c   :  { %v1969_v45 = vpop.permute.xlu0 %574  ;;  %v1971_v46 = vpop.permute.xlu1 %498 }
 0x39e   :  { %1609 = vset.pattern.permute.xlu1 %v1754_v47  ;;  %1634 = vset.pattern.permute.xlu0 %v1730_v16 }
 0x39f   :  { %1290 = vperm.xlu1 %1609, %v1855_v57   ;;  %794 = vperm.xlu0 %1634, %v1859_v58  }
 0x3a1   :  { %v1977_v48 = vpop.permute.xlu0 %614  ;;  %v1979_v49 = vpop.permute.xlu1 %510 }
 0x3a3   :  { %1610 = vset.pattern.permute.xlu1 %v1755_v50  ;;  %1637 = vset.pattern.permute.xlu0 %v1734_v20 }
 0x3a4   :  { %1310 = vperm.xlu1 %1610, %v1855_v57   ;;  %838 = vperm.xlu0 %1637, %v1859_v58  }
 0x3a6   :  { %v1985_v51 = vpop.permute.xlu0 %654  ;;  %v1987_v52 = vpop.permute.xlu1 %522 }
 0x3a8   :  { %1612 = vset.pattern.permute.xlu1 %v2593_v53  ;;  %1639 = vset.pattern.permute.xlu0 %v1736_v22 }
 0x3a9   :  { %1350 = vperm.xlu1 %1612, %v1855_v57   ;;  %878 = vperm.xlu0 %1639, %v1859_v58  }
 0x3ab   :  { %v1993_v55 = vpop.permute.xlu0 %694  ;;  %v1995_v2 = vpop.permute.xlu1 %554 }
 0x3ad   :  { %1613 = vset.pattern.permute.xlu1 %v1757_v4  ;;  %1641 = vset.pattern.permute.xlu0 %v1738_v26 }
 0x3ae   :  { %1360 = vperm.xlu1 %1613, %v1855_v57   ;;  %918 = vperm.xlu0 %1641, %v1859_v58  }
 0x3b0   :  { %v2000_v6 = vpop.permute.xlu0 %734  ;;  %v2002_v8 = vpop.permute.xlu1 %594 }
 0x3b2   :  { %1615 = vset.pattern.permute.xlu1 %v2591_v10  ;;  %1643 = vset.pattern.permute.xlu0 %v1740_v28 }
 0x3b3   :  { %1380 = vperm.xlu1 %1615, %v1855_v57   ;;  %958 = vperm.xlu0 %1643, %v1859_v58  }
 0x3b5   :  { %v2008_v12 = vpop.permute.xlu0 %774  ;;  %v2010_v16 = vpop.permute.xlu1 %634 }
 0x3b7   :  { %1617 = vset.pattern.permute.xlu1 %v1710_v60  ;;  %1645 = vset.pattern.permute.xlu0 %v1742_v30 }
 0x3b8   :  { %494 = vperm.xlu1 %1617, %v1859_v58   ;;  %998 = vperm.xlu0 %1645, %v1859_v58  }
 0x3ba   :  { %v2016_v20 = vpop.permute.xlu0 %810  ;;  %v2018_v22 = vpop.permute.xlu1 %674 }
 0x3bc   :  { %1618 = vset.pattern.permute.xlu1 %v1712_v62  ;;  %1647 = vset.pattern.permute.xlu0 %v1744_v32 }
 0x3bd   :  { %506 = vperm.xlu1 %1618, %v1859_v58   ;;  %1038 = vperm.xlu0 %1647, %v1859_v58  }
 0x3bf   :  { %v2024_v57 = vpop.permute.xlu0 %862  ;;  %v2026_v60 = vpop.permute.xlu1 %714 }
 0x3c1   :  { %1619 = vset.pattern.permute.xlu1 %v1714_v0  ;;  %1650 = vset.pattern.permute.xlu0 %v1747_v35 }
 0x3c2   :  { %518 = vperm.xlu1 %1619, %v1859_v58   ;;  %1082 = vperm.xlu0 %1650, %v1859_v58  }
 0x3c4   :  { %v2032_v26 = vpop.permute.xlu0 %902  ;;  %v2034_v62 = vpop.permute.xlu1 %754 }
 0x3c6   :  { %1620 = vset.pattern.permute.xlu1 %v1706_v40  ;;  %1653 = vset.pattern.permute.xlu0 %v1749_v37 }
 0x3c7   :  { %530 = vperm.xlu1 %1620, %v1859_v58   ;;  %1126 = vperm.xlu0 %1653, %v1859_v58  }
 0x3c9   :  { %v2040_v28 = vpop.permute.xlu0 %942  ;;  %v2042_v0 = vpop.permute.xlu1 %786 }
 0x3cb   :  { %1622 = vset.pattern.permute.xlu1 %v1709_v59  ;;  %1655 = vset.pattern.permute.xlu0 %v1750_v38  ;;  %v558_v38 = vmul.f32 %v1995_v2, %v1825_v25 }
 0x3cc   :  { %570 = vperm.xlu1 %1622, %v1859_v58   ;;  %1166 = vperm.xlu0 %1655, %v1859_v58  }
 0x3ce   :  { %v2048_v30 = vpop.permute.xlu0 %982  ;;  %v2050_v40 = vpop.permute.xlu1 %798 }
 0x3d0   :  { %1624 = vset.pattern.permute.xlu1 %v1711_v61  ;;  %1656 = vset.pattern.permute.xlu0 %v1751_v39 }
 0x3d1   :  { %610 = vperm.xlu1 %1624, %v1859_v58   ;;  %1186 = vperm.xlu0 %1656, %v1859_v58  }
 0x3d3   :  { %v2056_v32 = vpop.permute.xlu0 %1022  ;;  %v2058_v59 = vpop.permute.xlu1 %822 }
 0x3d5   :  { %1626 = vset.pattern.permute.xlu1 %v1713_v63  ;;  %1659 = vset.pattern.permute.xlu0 %v1753_v44 }
 0x3d6   :  { %650 = vperm.xlu1 %1626, %v1859_v58   ;;  %1246 = vperm.xlu0 %1659, %v1859_v58  }
 0x3d8   :  { %v2064_v35 = vpop.permute.xlu0 %1062  ;;  %v843_v61 = vpop.permute.xlu1 %842 }
 0x3d9   :  { %2595 = vst [vmem:[#allocation5_spill] sm:$0xff] %v2064_v35  ;;  %v578_v35 = vmul.f32 %v1969_v45, %v1825_v25  ;;  %v658_v45 = vmul.f32 %v1985_v51, %v1825_v25 }
 0x3da   :  { %1628 = vset.pattern.permute.xlu1 %v1715_v1  ;;  %1662 = vset.pattern.permute.xlu0 %v1755_v50 }
 0x3db   :  { %690 = vperm.xlu1 %1628, %v1859_v58   ;;  %1306 = vperm.xlu0 %1662, %v1859_v58  }
 0x3dd   :  { %v2070_v37 = vpop.permute.xlu0 %1098  ;;  %v883_v63 = vpop.permute.xlu1 %882 }
 0x3df   :  { %1630 = vset.pattern.permute.xlu1 %v1717_v3  ;;  %1665 = vset.pattern.permute.xlu0 %v1757_v4  ;;  %v598_v3 = vmul.f32 %v2002_v8, %v1825_v25  ;;  %v678_v8 = vmul.f32 %v2018_v22, %v1825_v25 }
 0x3e0   :  { %730 = vperm.xlu1 %1630, %v1859_v58   ;;  %1356 = vperm.xlu0 %1665, %v1859_v58  }
 0x3e2   :  { %v2077_v1 = vpop.permute.xlu0 %1150  ;;  %v923_v39 = vpop.permute.xlu1 %922 }
 0x3e4   :  { %1632 = vset.pattern.permute.xlu1 %v1719_v5  ;;  %563 = vrot.lane.b32.xlu0 %v558_v38, %s1759_s3  ;;  %v638_v5 = vmul.f32 %v2010_v16, %v1825_v25  ;;  %v718_v16 = vmul.f32 %v2026_v60, %v1825_v25 }
 0x3e5   :  { %770 = vperm.xlu1 %1632, %v1859_v58   ;;  %v2082_v44 = vpop.f32.mrb[2].mxu0  ;;  %1668 = vset.pattern.permute.xlu0 %v2591_v10 }
 0x3e6   :  { %v2087_v50 = vpop.f32.mrb[3].mxu0 }
 0x3e7   :  { %v2089_v2 = vpop.permute.xlu0 %1210  ;;  %v963_v4 = vpop.permute.xlu1 %962 }
 0x3e8   :  { %603 = vrot.lane.b32.xlu0 %v598_v3, %s1759_s3 }
 0x3e9   :  { %1633 = vset.pattern.permute.xlu1 %v1728_v14 }
 0x3ea   :  { %782 = vperm.xlu1 %1633, %v1859_v58  }
 0x3ec   :  { %v2096_v38 = vpop.permute.xlu0 %1270  ;;  %v1003_v10 = vpop.permute.xlu1 %1002  ;;  %643 = vrot.lane.b32.xlu0 %v638_v5, %s1760_s21 }
 0x3ee   :  { %1635 = vset.pattern.permute.xlu1 %v1721_v7  ;;  %v758_v7 = vmul.f32 %v2034_v62, %v1825_v25  ;;  %v886_v62 = vmul.f32 %v1849_v54, %v883_v63  ;;  %v966_v63 = vmul.f32 %v1849_v54, %v963_v4 }
 0x3ef   :  { %806 = vperm.xlu1 %1635, %v1859_v58  }
 0x3f0   :  { %683 = vrot.lane.b32.xlu0 %v678_v8, %s1760_s21 }
 0x3f1   :  { %v1331_v14 = vpop.permute.xlu0 %1330  ;;  %v1043_v3 = vpop.permute.xlu1 %1042 }
 0x3f2   :  { %v2107_v33 = vmul.f32 %v2082_v44, %v1331_v14  ;;  %v1046_v4 = vmul.f32 %v1849_v54, %v1043_v3 }
 0x3f3   :  { %1636 = vset.pattern.permute.xlu1 %v1732_v18  ;;  %v846_v18 = vmul.f32 %v1849_v54, %v843_v61  ;;  %v926_v61 = vmul.f32 %v1849_v54, %v923_v39  ;;  %v1006_v39 = vmul.f32 %v1849_v54, %v1003_v10 }
 0x3f4   :  { %818 = vperm.xlu1 %1636, %v1859_v58   ;;  %723 = vrot.lane.b32.xlu0 %v718_v16, %s1761_s22 }
 0x3f6   :  { %v2114_v22 = vpop.permute.xlu0 %1370  ;;  %v2116_v5 = vpop.permute.xlu1 %1074 }
 0x3f7   :  { %2596 = vst [vmem:[#allocation6_spill] sm:$0xff] %v2114_v22 }
 0x3f8   :  { %1638 = vset.pattern.permute.xlu1 %v1723_v9  ;;  %763 = vrot.lane.b32.xlu0 %v758_v7, %s1761_s22 }
 0x3f9   :  { %858 = vperm.xlu1 %1638, %v1859_v58  }
 0x3fb   :  { %v2122_v60 = vpop.permute.xlu1 %1086  ;;  %v2124_v8 = vpop.permute.xlu0 %481 }
 0x3fc   :  { %2597 = vst [vmem:[#allocation7_spill] sm:$0xff] %v2122_v60  ;;  %2598 = vst [vmem:[#allocation8_spill] sm:$0xff] %v2124_v8  ;;  %851 = vrot.lane.b32.xlu0 %v846_v18, %s1759_s3  ;;  %v2610_v8 = vmov 50  }
 0x3fd   :  { %1640 = vset.pattern.permute.xlu1 %v1725_v11 }
 0x3fe   :  { %898 = vperm.xlu1 %1640, %v1859_v58  }
 0x400   :  { %v2130_v14 = vpop.permute.xlu1 %1110  ;;  %891 = vrot.lane.b32.xlu0 %v886_v62, %s1759_s3  ;;  %v2133_v9 = vpop.permute.xlu0 %550 }
 0x402   :  { %1642 = vset.pattern.permute.xlu1 %v1727_v13 }
 0x403   :  { %938 = vperm.xlu1 %1642, %v1859_v58  }
 0x404   :  { %931 = vrot.lane.b32.xlu0 %v926_v61, %s1760_s21 }
 0x405   :  { %v2139_v16 = vpop.permute.xlu1 %1130  ;;  %v2141_v11 = vpop.permute.xlu0 %590 }
 0x407   :  { %1644 = vset.pattern.permute.xlu1 %v1729_v15 }
 0x408   :  { %978 = vperm.xlu1 %1644, %v1859_v58   ;;  %971 = vrot.lane.b32.xlu0 %v966_v63, %s1760_s21 }
 0x40a   :  { %v2148_v7 = vpop.permute.xlu1 %1170  ;;  %v2150_v13 = vpop.permute.xlu0 %630 }
 0x40c   :  { %1646 = vset.pattern.permute.xlu1 %v1731_v17  ;;  %1011 = vrot.lane.b32.xlu0 %v1006_v39, %s1761_s22 }
 0x40d   :  { %1018 = vperm.xlu1 %1646, %v1859_v58  }
 0x40f   :  { %v2156_v18 = vpop.permute.xlu1 %1190  ;;  %v2158_v15 = vpop.permute.xlu0 %670 }
 0x410   :  { %1051 = vrot.lane.b32.xlu0 %v1046_v4, %s1761_s22 }
 0x411   :  { %1648 = vset.pattern.permute.xlu1 %v1733_v19 }
 0x412   :  { %1058 = vperm.xlu1 %1648, %v1859_v58  }
 0x414   :  { %v2163_v10 = vpop.permute.xlu1 %1230  ;;  %v2165_v62 = vpop.permute.xlu0 %710 }
 0x416   :  { %1649 = vset.pattern.permute.xlu1 %v1746_v34 }
 0x417   :  { %1070 = vperm.xlu1 %1649, %v1859_v58  }
 0x419   :  { %v2169_v17 = vpop.permute.xlu1 %1250  ;;  %v2171_v3 = vpop.permute.xlu0 %750 }
 0x41b   :  { %1651 = vset.pattern.permute.xlu1 %v1735_v21 }
 0x41c   :  { %1094 = vperm.xlu1 %1651, %v1859_v58  }
 0x41e   :  { %v2175_v61 = vpop.permute.xlu1 %1290  ;;  %v795_v19 = vpop.permute.xlu0 %794 }
 0x41f   :  { %v2178_v63 = vmul.f32 %v795_v19, %v1851_v56 }
 0x420   :  { %1652 = vset.pattern.permute.xlu1 %v1748_v36 }
 0x421   :  { %2599 = vst [vmem:[#allocation9_spill] sm:$0xff] %v2178_v63  ;;  %1106 = vperm.xlu1 %1652, %v1859_v58  }
 0x423   :  { %v2182_v34 = vpop.permute.xlu1 %1310  ;;  %v2184_v39 = vpop.permute.xlu0 %838 }
 0x425   :  { %1654 = vset.pattern.permute.xlu1 %v1737_v23 }
 0x426   :  { %1146 = vperm.xlu1 %1654, %v1859_v58  }
 0x428   :  { %v2188_v21 = vpop.permute.xlu1 %1350  ;;  %v2190_v4 = vpop.permute.xlu0 %878 }
 0x429   :  { %2600 = vst [vmem:[#allocation10_spill] sm:$0xff] %v2188_v21  ;;  %v2605_v21 = vmov 47  }
 0x42a   :  { %1657 = vset.pattern.permute.xlu1 %v1739_v27 }
 0x42b   :  { %1206 = vperm.xlu1 %1657, %v1859_v58  }
 0x42d   :  { %v2194_v19 = vpop.permute.xlu1 %1360  ;;  %v2196_v36 = vpop.permute.xlu0 %918 }
 0x42e   :  { %2601 = vst [vmem:[#allocation11_spill] sm:$0xff] %v2194_v19 }
 0x42f   :  { %1658 = vset.pattern.permute.xlu1 %v1752_v41 }
 0x430   :  { %1226 = vperm.xlu1 %1658, %v1859_v58  }
 0x432   :  { %v2200_v53 = vpop.permute.xlu1 %1380  ;;  %v2202_v23 = vpop.permute.xlu0 %958 }
 0x433   :  { %2602 = vst [vmem:[#allocation12_spill] sm:$0xff] %v2200_v53 }
 0x434   :  { %1660 = vset.pattern.permute.xlu1 %v1741_v29 }
 0x435   :  { %1266 = vperm.xlu1 %1660, %v1859_v58  }
 0x437   :  { %v2206_v31 = vpop.permute.xlu1 %494  ;;  %v2208_v27 = vpop.permute.xlu0 %998 }
 0x438   :  { %2603 = vst [vmem:[#allocation13_spill] sm:$0xff] %v2206_v31  ;;  %v2608_v31 = vmov 48  }
 0x439   :  { %1661 = vset.pattern.permute.xlu1 %v1754_v47 }
 0x43a   :  { %1286 = vperm.xlu1 %1661, %v1859_v58  }
 0x43c   :  { %v2212_v22 = vpop.permute.xlu1 %506  ;;  %v2214_v41 = vpop.permute.xlu0 %1038 }
 0x43d   :  { %2604 = vst [vmem:[#allocation14_spill] sm:$0xff] %v2212_v22 }
 0x43e   :  { %1663 = vset.pattern.permute.xlu1 %v2605_v21 }
 0x43f   :  { %1326 = vperm.xlu1 %1663, %v1859_v58  }
 0x441   :  { %v2218_v63 = vpop.permute.xlu1 %518  ;;  %v1083_v29 = vpop.permute.xlu0 %1082 }
 0x442   :  { %2606 = vst [vmem:[#allocation15_spill] sm:$0xff] %v2218_v63  ;;  %v2221_v53 = vmul.f32 %v1083_v29, %v2087_v50 }
 0x443   :  { %1664 = vset.pattern.permute.xlu1 %v2608_v31  ;;  %v538_v31 = vmul.f32 %v1961_v42, %v1825_v25 }
 0x444   :  { %2607 = vst [vmem:[#allocation16_spill] sm:$0xff] %v2221_v53  ;;  %1346 = vperm.xlu1 %1664, %v1859_v58   ;;  %v2612_v53 = vmov 51  }
 0x446   :  { %v2225_v47 = vpop.permute.xlu1 %530  ;;  %v1127_v19 = vpop.permute.xlu0 %1126 }
 0x447   :  { %v2228_v22 = vmul.f32 %v1127_v19, %v2087_v50 }
 0x448   :  { %1666 = vset.pattern.permute.xlu1 %v2610_v8 }
 0x449   :  { %2609 = vst [vmem:[#allocation17_spill] sm:$0xff] %v2228_v22  ;;  %1366 = vperm.xlu1 %1666, %v1859_v58  }
 0x44b   :  { %v2232_v21 = vpop.permute.xlu1 %570  ;;  %v1167_v63 = vpop.permute.xlu0 %1166 }
 0x44c   :  { %v2235_v29 = vmul.f32 %v1167_v63, %v2087_v50 }
 0x44d   :  { %1667 = vset.pattern.permute.xlu1 %v2612_v53 }
 0x44e   :  { %2611 = vst [vmem:[#allocation18_spill] sm:$0xff] %v2235_v29  ;;  %1376 = vperm.xlu1 %1667, %v1859_v58   ;;  %v618_v58 = vmul.f32 %v1977_v48, %v1825_v25  ;;  %v698_v48 = vmul.f32 %v1993_v55, %v1825_v25  ;;  %v526_v55 = vmul.f32 %v1987_v52, %v1825_v25 }
 0x44f   :  { %v946_v52 = vmul.f32 %v1849_v54, %v2040_v28 }
 0x450   :  { %v2241_v60 = vpop.permute.xlu1 %610  ;;  %v1187_v19 = vpop.permute.xlu0 %1186 }
 0x451   :  { %v2244_v8 = vmul.f32 %v1187_v19, %v2087_v50 }
 0x452   :  { %543 = vrot.lane.b32.xlu1 %v538_v31, %s1759_s3 }
 0x453   :  { %2613 = vst [vmem:[#allocation19_spill] sm:$0xff] %v2244_v8 }
 0x455   :  { %v2249_v63 = vpop.permute.xlu1 %650  ;;  %v1247_v29 = vpop.permute.xlu0 %1246 }
 0x456   :  { %v2252_v53 = vmul.f32 %v1247_v29, %v2087_v50  ;;  %583 = vrot.lane.b32.xlu1 %v578_v35, %s1759_s3 }
 0x458   :  { %2614 = vst [vmem:[#allocation20_spill] sm:$0xff] %v2252_v53 }
 0x45a   :  { %623 = vrot.lane.b32.xlu1 %v618_v58, %s1760_s21  ;;  %v2258_v42 = vpop.permute.xlu1 %690  ;;  %v1307_v19 = vpop.permute.xlu0 %1306  ;;  %v738_v58 = vmul.f32 %v2000_v6, %v1825_v25 }
 0x45b   :  { %v2261_v31 = vmul.f32 %v1307_v19, %v2087_v50 }
 0x45d   :  { %2615 = vst [vmem:[#allocation21_spill] sm:$0xff] %v2261_v31 }
 0x45e   :  { %663 = vrot.lane.b32.xlu1 %v658_v45, %s1760_s21  ;;  %v826_v45 = vmul.f32 %v1849_v54, %v2058_v59  ;;  %v906_v59 = vmul.f32 %v1849_v54, %v2032_v26  ;;  %v986_v26 = vmul.f32 %v1849_v54, %v2048_v30  ;;  %v1174_v30 = vmul.f32 %v2082_v44, %v2148_v7 }
 0x45f   :  { %v2266_v29 = vpop.permute.xlu1 %730  ;;  %v2268_v53 = vpop.permute.xlu0 %1356 }
 0x460   :  { %2616 = vst [vmem:[#allocation22_spill] sm:$0xff] %v2268_v53 }
 0x462   :  { %703 = vrot.lane.b32.xlu1 %v698_v48, %s1761_s22  ;;  %v866_v48 = vmul.f32 %v1849_v54, %v2024_v57 }
 0x463   :  { %v564_v35 = vpop.permute.xlu0 %563 }
 0x464   :  { %v2275_v19 = vpop.permute.xlu1 %770 }
 0x465   :  { %2617 = vst [vmem:[#allocation23_spill] sm:$0xff] %v2275_v19 }
 0x466   :  { %743 = vrot.lane.b32.xlu1 %v738_v58, %s1761_s22 }
 0x467   :  { %v604_v51 = vpop.permute.xlu0 %603 }
 0x468   :  { %v608_v6 = vadd.f32 %v604_v51, %v526_v55  ;;  %v814_v51 = vmul.f32 %v1849_v54, %v2016_v20  ;;  %v1134_v55 = vmul.f32 %v2082_v44, %v2139_v16  ;;  %v1026_v20 = vmul.f32 %v1849_v54, %v2056_v32 }
 0x469   :  { %v2280_v31 = vpop.permute.xlu1 %782 }
 0x46a   :  { %2618 = vst [vmem:[#allocation24_spill] sm:$0xff] %v2280_v31  ;;  %831 = vrot.lane.b32.xlu1 %v826_v45, %s1759_s3 }
 0x46b   :  { %v644_v53 = vpop.permute.xlu0 %643 }
 0x46e   :  { %871 = vrot.lane.b32.xlu1 %v866_v48, %s1759_s3  ;;  %v2288_v19 = vpop.permute.xlu1 %806 }
 0x46f   :  { %v684_v58 = vpop.permute.xlu0 %683 }
 0x470   :  { %v688_v8 = vadd.f32 %v684_v58, %v608_v6 }
 0x472   :  { %911 = vrot.lane.b32.xlu1 %v906_v59, %s1760_s21 }
 0x473   :  { %v819_v45 = vpop.permute.xlu1 %818  ;;  %v724_v31 = vpop.permute.xlu0 %723 }
 0x474   :  { %v825_v22 = vmul.f32 %v819_v45, %v1851_v56  ;;  %v1194_v45 = vmul.f32 %v2082_v44, %v2156_v18  ;;  %v557_v18 = vmul.f32 %v2133_v9, %v1820_v24 }
 0x476   :  { %951 = vrot.lane.b32.xlu1 %v946_v52, %s1760_s21  ;;  %829 = vrot.lane.b32.xlu0 %v825_v22, %s1759_s3  ;;  %v502_v22 = vmul.f32 %v1971_v46, %v1825_v25  ;;  %v537_v25 = vmul.f32 %v2225_v47, %v1820_v24 }
 0x477   :  { %v764_v57 = vpop.permute.xlu0 %763 }
 0x478   :  { %v768_v48 = vadd.f32 %v764_v57, %v688_v8  ;;  %v2304_v6 = vpop.permute.xlu1 %858  ;;  %v568_v16 = vadd.f32 %v564_v35, %v502_v22  ;;  %v790_v35 = vmul.f32 %v1849_v54, %v2042_v0  ;;  %v1214_v57 = vmul.f32 %v2082_v44, %v2089_v2 }
 0x479   :  { %v577_v0 = vmul.f32 %v2232_v21, %v1820_v24  ;;  %v1078_v2 = vmul.f32 %v2082_v44, %v2116_v5  ;;  %v1254_v22 = vmul.f32 %v2082_v44, %v2169_v17  ;;  %v1274_v5 = vmul.f32 %v2082_v44, %v2096_v38 }
 0x47a   :  { %991 = vrot.lane.b32.xlu1 %v986_v26, %s1761_s22  ;;  %1139 = vrot.lane.b32.xlu0 %v1134_v55, %s1759_s3  ;;  %v816_v28 = vadd.f32 %v814_v51, %v768_v48  ;;  %v648_v46 = vadd.f32 %v644_v53, %v568_v16  ;;  %v597_v48 = vmul.f32 %v2141_v11, %v1820_v24  ;;  %v2359_v24 = vld [vmem:[%s2586_s0] sm:$0xff] }
 0x47b   :  { %v852_v58 = vpop.permute.xlu0 %851  ;;  %v617_v11 = vmul.f32 %v2359_v24, %v2241_v60  ;;  %v637_v38 = vmul.f32 %v2359_v24, %v2150_v13  ;;  %v657_v60 = vmul.f32 %v2359_v24, %v2249_v63  ;;  %v717_v63 = vmul.f32 %v2359_v24, %v2165_v62 }
 0x47c   :  { %v728_v52 = vadd.f32 %v724_v31, %v648_v46  ;;  %v1234_v31 = vmul.f32 %v2082_v44, %v2163_v10  ;;  %v845_v62 = vmul.f32 %v2184_v39, %v1851_v56 }
 0x47d   :  { %v2314_v59 = vpop.permute.xlu1 %898 }
 0x47e   :  { %1031 = vrot.lane.b32.xlu1 %v1026_v20, %s1761_s22  ;;  %1179 = vrot.lane.b32.xlu0 %v1174_v30, %s1759_s3  ;;  %v792_v51 = vadd.f32 %v790_v35, %v728_v52  ;;  %v697_v52 = vmul.f32 %v2359_v24, %v2258_v42 }
 0x47f   :  { %v892_v8 = vpop.permute.xlu0 %891 }
 0x480   :  { %v856_v26 = vadd.f32 %v852_v58, %v792_v51  ;;  %v896_v10 = vadd.f32 %v892_v8, %v816_v28  ;;  %v1102_v28 = vmul.f32 %v2082_v44, %v2070_v37  ;;  %v1314_v37 = vmul.f32 %v2082_v44, %v2182_v34 }
 0x481   :  { %v885_v51 = vmul.f32 %v2190_v4, %v1851_v56 }
 0x482   :  { %541 = vrot.lane.b32.xlu1 %v537_v25, %s1759_s3  ;;  %v2323_v32 = vpop.permute.xlu1 %938  ;;  %1199 = vrot.lane.b32.xlu0 %v1194_v45, %s1760_s21  ;;  %v1294_v25 = vmul.f32 %v2082_v44, %v2175_v61  ;;  %v677_v61 = vmul.f32 %v2359_v24, %v2158_v15  ;;  %v737_v15 = vmul.f32 %v2359_v24, %v2266_v29 }
 0x483   :  { %v932_v7 = vpop.permute.xlu0 %931  ;;  %v945_v4 = vmul.f32 %v2323_v32, %v1851_v56 }
 0x484   :  { %v936_v55 = vadd.f32 %v932_v7, %v856_v26 }
 0x486   :  { %561 = vrot.lane.b32.xlu1 %v557_v18, %s1759_s3  ;;  %1219 = vrot.lane.b32.xlu0 %v1214_v57, %s1760_s21  ;;  %v757_v57 = vmul.f32 %v2359_v24, %v2171_v3 }
 0x487   :  { %v2334_v47 = vpop.permute.xlu1 %978  ;;  %v972_v53 = vpop.permute.xlu0 %971 }
 0x488   :  { %v976_v21 = vadd.f32 %v972_v53, %v896_v10  ;;  %v905_v53 = vmul.f32 %v2314_v59, %v1851_v56  ;;  %v985_v26 = vmul.f32 %v2334_v47, %v1851_v56 }
 0x48a   :  { %581 = vrot.lane.b32.xlu1 %v577_v0, %s1759_s3  ;;  %1239 = vrot.lane.b32.xlu0 %v1234_v31, %s1760_s21  ;;  %v965_v0 = vmul.f32 %v2202_v23, %v1851_v56 }
 0x48b   :  { %v1012_v9 = vpop.permute.xlu0 %1011 }
 0x48c   :  { %v1016_v20 = vadd.f32 %v1012_v9, %v936_v55  ;;  %v2348_v30 = vpop.permute.xlu1 %1018  ;;  %v1005_v55 = vmul.f32 %v2208_v27, %v1851_v56  ;;  %v1678_v9 = vld [vmem:[%s2586_s0 + $0x8] sm:$0xff] }
 0x48d   :  { %v1025_v23 = vmul.f32 %v2348_v30, %v1851_v56  ;;  %v490_v47 = vmul.f32 %v1678_v9, %v1963_v43  ;;  %v514_v10 = vmul.f32 %v1678_v9, %v1979_v49  ;;  %v1114_v30 = vmul.f32 %v2082_v44, %v2130_v14 }
 0x48e   :  { %601 = vrot.lane.b32.xlu1 %v597_v48, %s1759_s3  ;;  %1259 = vrot.lane.b32.xlu0 %v1254_v22, %s1760_s21  ;;  %v2352_v58 = vadd.f32 %v1078_v2, %v1016_v20  ;;  %v1045_v48 = vmul.f32 %v2214_v41, %v1851_v56  ;;  %v1154_v43 = vmul.f32 %v2082_v44, %v2077_v1 }
 0x48f   :  { %v1052_v16 = vpop.permute.xlu0 %1051  ;;  %v778_v41 = vmul.f32 %v1849_v54, %v2008_v12  ;;  %v802_v14 = vmul.f32 %v1849_v54, %v2050_v40 }
 0x490   :  { %v1056_v17 = vadd.f32 %v1052_v16, %v976_v21 }
 0x491   :  { %v2365_v8 = vpop.permute.xlu1 %1058 }
 0x492   :  { %621 = vrot.lane.b32.xlu1 %v617_v11, %s1760_s21  ;;  %1279 = vrot.lane.b32.xlu0 %v1274_v5, %s1761_s22  ;;  %v2369_v45 = vadd.f32 %v1102_v28, %v1056_v17 }
 0x496   :  { %v2375_v46 = vpop.permute.xlu1 %1070  ;;  %641 = vrot.lane.b32.xlu1 %v637_v38, %s1760_s21  ;;  %1299 = vrot.lane.b32.xlu0 %v1294_v25, %s1761_s22  ;;  %v2619_v25 = vld [vmem:[#allocation17_spill] sm:$0xff] }
 0x49a   :  { %661 = vrot.lane.b32.xlu1 %v657_v60, %s1760_s21  ;;  %1319 = vrot.lane.b32.xlu0 %v1314_v37, %s1761_s22 }
 0x49b   :  { %v2385_v13 = vpop.permute.xlu1 %1094 }
 0x49e   :  { %681 = vrot.lane.b32.xlu1 %v677_v61, %s1760_s21 }
 0x4a0   :  { %v1107_v7 = vpop.permute.xlu1 %1106 }
 0x4a1   :  { %v1113_v34 = vmul.f32 %v1107_v7, %v2087_v50 }
 0x4a2   :  { %701 = vrot.lane.b32.xlu1 %v697_v52, %s1761_s22 }
 0x4a3   :  { %1117 = vrot.lane.b32.xlu0 %v1113_v34, %s1759_s3 }
 0x4a5   :  { %v1147_v35 = vpop.permute.xlu1 %1146 }
 0x4a6   :  { %721 = vrot.lane.b32.xlu1 %v717_v63, %s1761_s22  ;;  %v1153_v37 = vmul.f32 %v1147_v35, %v2087_v50  ;;  %v2620_v63 = vld [vmem:[#allocation18_spill] sm:$0xff] }
 0x4a7   :  { %1339 = vrot.lane.b32.xlu0 %v2107_v33, %s1761_s22  ;;  %v865_v33 = vmul.f32 %v2304_v6, %v1851_v56  ;;  %v925_v6 = vmul.f32 %v2196_v36, %v1851_v56 }
 0x4aa   :  { %v2402_v42 = vpop.permute.xlu1 %1206  ;;  %741 = vrot.lane.b32.xlu1 %v737_v15, %s1761_s22 }
 0x4ab   :  { %v1213_v35 = vmul.f32 %v2402_v42, %v2087_v50 }
 0x4ae   :  { %761 = vrot.lane.b32.xlu1 %v757_v57, %s1761_s22  ;;  %v2621_v57 = vld [vmem:[#allocation19_spill] sm:$0xff] }
 0x4af   :  { %v2408_v18 = vpop.permute.xlu1 %1226 }
 0x4b2   :  { %849 = vrot.lane.b32.xlu1 %v845_v62, %s1759_s3 }
 0x4b4   :  { %v2415_v29 = vpop.permute.xlu1 %1266 }
 0x4b6   :  { %869 = vrot.lane.b32.xlu1 %v865_v33, %s1759_s3 }
 0x4b9   :  { %v2420_v3 = vpop.permute.xlu1 %1286 }
 0x4ba   :  { %889 = vrot.lane.b32.xlu1 %v885_v51, %s1759_s3 }
 0x4be   :  { %v2425_v39 = vpop.permute.xlu1 %1326  ;;  %909 = vrot.lane.b32.xlu1 %v905_v53, %s1760_s21  ;;  %v1233_v53 = vmul.f32 %v2408_v18, %v2087_v50  ;;  %v2625_v18 = vld [vmem:[#allocation8_spill] sm:$0xff] }
 0x4c2   :  { %929 = vrot.lane.b32.xlu1 %v925_v6, %s1760_s21 }
 0x4c3   :  { %v2431_v31 = vpop.permute.xlu1 %1346 }
 0x4c6   :  { %949 = vrot.lane.b32.xlu1 %v945_v4, %s1760_s21 }
 0x4c8   :  { %v2438_v59 = vpop.permute.xlu1 %1366 }
 0x4ca   :  { %969 = vrot.lane.b32.xlu1 %v965_v0, %s1760_s21 }
 0x4cd   :  { %v2443_v36 = vpop.permute.xlu1 %1376 }
 0x4ce   :  { %989 = vrot.lane.b32.xlu1 %v985_v26, %s1761_s22  ;;  %v2622_v26 = vld [vmem:[#allocation5_spill] sm:$0xff] }
 0x4d1   :  { %v544_v32 = vpop.permute.xlu1 %543 }
 0x4d2   :  { %1009 = vrot.lane.b32.xlu1 %v1005_v55, %s1761_s22  ;;  %v548_v22 = vadd.f32 %v544_v32, %v490_v47  ;;  %v1066_v55 = vmul.f32 %v2082_v44, %v2622_v26  ;;  %v2631_v26 = vld [vmem:[#allocation12_spill] sm:$0xff] }
 0x4d5   :  { %v584_v2 = vpop.permute.xlu1 %583 }
 0x4d6   :  { %1029 = vrot.lane.b32.xlu1 %v1025_v23, %s1761_s22  ;;  %v588_v21 = vadd.f32 %v584_v2, %v514_v10  ;;  %v2623_v2 = vld [vmem:[#allocation7_spill] sm:$0xff] }
 0x4d7   :  { %v1090_v9 = vmul.f32 %v2082_v44, %v2623_v2  ;;  %v1293_v44 = vmul.f32 %v2420_v3, %v2087_v50  ;;  %v2632_v2 = vld [vmem:[#allocation23_spill] sm:$0xff] }
 0x4d9   :  { %v624_v27 = vpop.permute.xlu1 %623 }
 0x4da   :  { %v628_v20 = vadd.f32 %v624_v27, %v548_v22  ;;  %1049 = vrot.lane.b32.xlu1 %v1045_v48, %s1761_s22  ;;  %v2624_v48 = vld [vmem:[#allocation20_spill] sm:$0xff]  ;;  %v489_v22 = vmul.f32 %v2359_v24, %v2625_v18  ;;  %v1273_v27 = vmul.f32 %v2415_v29, %v2087_v50 }
 0x4dd   :  { %v664_v16 = vpop.permute.xlu1 %663 }
 0x4de   :  { %v668_v5 = vadd.f32 %v664_v16, %v588_v21  ;;  %1119 = vrot.lane.b32.xlu1 %v1114_v30, %s1759_s3 }
 0x4e1   :  { %v704_v11 = vpop.permute.xlu1 %703 }
 0x4e2   :  { %v708_v17 = vadd.f32 %v704_v11, %v628_v20  ;;  %1159 = vrot.lane.b32.xlu1 %v1154_v43, %s1759_s3 }
 0x4e4   :  { %v780_v49 = vadd.f32 %v778_v41, %v708_v17 }
 0x4e5   :  { %v744_v28 = vpop.permute.xlu1 %743 }
 0x4e6   :  { %v748_v38 = vadd.f32 %v744_v28, %v668_v5  ;;  %1137 = vrot.lane.b32.xlu1 %v2619_v25, %s1759_s3  ;;  %v2627_v28 = vld [vmem:[#allocation11_spill] sm:$0xff] }
 0x4e8   :  { %v2473_v60 = vpop.permute.xlu0 %829  ;;  %v804_v1 = vadd.f32 %v802_v14, %v748_v38  ;;  %v1333_v38 = vmul.f32 %v2425_v39, %v2087_v50 }
 0x4e9   :  { %v832_v61 = vpop.permute.xlu1 %831 }
 0x4ea   :  { %v836_v52 = vadd.f32 %v832_v61, %v780_v49  ;;  %1157 = vrot.lane.b32.xlu1 %v1153_v37, %s1759_s3  ;;  %v2626_v49 = vld [vmem:[#allocation21_spill] sm:$0xff] }
 0x4eb   :  { %v2628_v37 = vld [vmem:[#allocation13_spill] sm:$0xff] }
 0x4ec   :  { %v1140_v12 = vpop.permute.xlu0 %1139 }
 0x4ed   :  { %v872_v7 = vpop.permute.xlu1 %871  ;;  %v1144_v5 = vadd.f32 %v1140_v12, %v2352_v58 }
 0x4ee   :  { %v876_v34 = vadd.f32 %v872_v7, %v804_v1  ;;  %1177 = vrot.lane.b32.xlu1 %v2620_v63, %s1759_s3  ;;  %v501_v1 = vmul.f32 %v2359_v24, %v2628_v37 }
 0x4f0   :  { %v1180_v54 = vpop.permute.xlu0 %1179 }
 0x4f1   :  { %v912_v40 = vpop.permute.xlu1 %911  ;;  %v1184_v63 = vadd.f32 %v1180_v54, %v2369_v45 }
 0x4f2   :  { %v916_v15 = vadd.f32 %v912_v40, %v836_v52  ;;  %1197 = vrot.lane.b32.xlu1 %v2621_v57, %s1760_s21 }
 0x4f4   :  { %v2482_v62 = vpop.permute.xlu0 %1199 }
 0x4f5   :  { %v952_v33 = vpop.permute.xlu1 %951 }
 0x4f6   :  { %v956_v51 = vadd.f32 %v952_v33, %v876_v34  ;;  %1217 = vrot.lane.b32.xlu1 %v1213_v35, %s1760_s21  ;;  %v2629_v34 = vld [vmem:[#allocation14_spill] sm:$0xff] }
 0x4f7   :  { %v513_v39 = vmul.f32 %v2359_v24, %v2629_v34  ;;  %v1065_v34 = vmul.f32 %v2365_v8, %v2087_v50  ;;  %v1101_v8 = vmul.f32 %v2385_v13, %v2087_v50  ;;  %v2637_v13 = vld [vmem:[#allocation6_spill] sm:$0xff] }
 0x4f8   :  { %v1220_v6 = vpop.permute.xlu0 %1219 }
 0x4f9   :  { %v992_v4 = vpop.permute.xlu1 %991  ;;  %v1224_v11 = vadd.f32 %v1220_v6, %v1144_v5  ;;  %v2634_v5 = vld [vmem:[#allocation9_spill] sm:$0xff] }
 0x4fa   :  { %v996_v0 = vadd.f32 %v992_v4, %v916_v15  ;;  %1237 = vrot.lane.b32.xlu1 %v1233_v53, %s1760_s21 }
 0x4fc   :  { %v2490_v32 = vpop.permute.xlu0 %1239  ;;  %v2492_v42 = vadd.f32 %v1066_v55, %v996_v0 }
 0x4fd   :  { %v1032_v23 = vpop.permute.xlu1 %1031 }
 0x4fe   :  { %v1036_v47 = vadd.f32 %v1032_v23, %v956_v51  ;;  %1257 = vrot.lane.b32.xlu1 %v2624_v48, %s1760_s21  ;;  %v2630_v51 = vld [vmem:[#allocation15_spill] sm:$0xff] }
 0x4ff   :  { %v525_v53 = vmul.f32 %v2359_v24, %v2630_v51  ;;  %v2633_v24 = vld [vmem:[#allocation24_spill] sm:$0xff] }
 0x500   :  { %v1260_v10 = vpop.permute.xlu0 %1259  ;;  %v2502_v20 = vadd.f32 %v1090_v9, %v1036_v47  ;;  %v777_v9 = vmul.f32 %v2632_v2, %v1851_v56 }
 0x501   :  { %v542_v30 = vpop.permute.xlu1 %541  ;;  %v1264_v15 = vadd.f32 %v1260_v10, %v1184_v63 }
 0x502   :  { %v547_v21 = vadd.f32 %v542_v30, %v489_v22  ;;  %1277 = vrot.lane.b32.xlu1 %v1273_v27, %s1761_s22  ;;  %v789_v22 = vmul.f32 %v2633_v24, %v1851_v56 }
 0x504   :  { %v2507_v16 = vpop.permute.xlu0 %1279 }
 0x505   :  { %v562_v43 = vpop.permute.xlu1 %561 }
 0x506   :  { %1297 = vrot.lane.b32.xlu1 %v1293_v44, %s1761_s22  ;;  %v567_v52 = vadd.f32 %v562_v43, %v501_v1 }
 0x508   :  { %v1300_v41 = vpop.permute.xlu0 %1299 }
 0x509   :  { %v1304_v29 = vadd.f32 %v1300_v41, %v1224_v11  ;;  %v582_v17 = vpop.permute.xlu1 %581  ;;  %v813_v41 = vmul.f32 %v2288_v19, %v1851_v56 }
 0x50a   :  { %1317 = vrot.lane.b32.xlu1 %v2626_v49, %s1761_s22  ;;  %v587_v57 = vadd.f32 %v582_v17, %v513_v39 }
 0x50b   :  { %v1364_v14 = vadd.f32 %v2627_v28, %v1304_v29 }
 0x50c   :  { %v2521_v3 = vpop.permute.xlu0 %1319 }
 0x50d   :  { %1388 = vst.msk [vmem:[%s2590_s4 + $0x18] sm:$0xff] %vm123_vm1, %v1364_v14  ;;  %v602_v58 = vpop.permute.xlu1 %601 }
 0x50e   :  { %1337 = vrot.lane.b32.xlu1 %v1333_v38, %s1761_s22  ;;  %v607_v0 = vadd.f32 %v602_v58, %v525_v53 }
 0x511   :  { %v622_v25 = vpop.permute.xlu1 %621 }
 0x512   :  { %v627_v61 = vadd.f32 %v622_v25, %v547_v21 }
 0x515   :  { %v642_v12 = vpop.permute.xlu1 %641  ;;  %v1118_v7 = vpop.permute.xlu0 %1117 }
 0x516   :  { %v647_v40 = vadd.f32 %v642_v12, %v567_v52 }
 0x519   :  { %v662_v35 = vpop.permute.xlu1 %661  ;;  %v1340_v33 = vpop.permute.xlu0 %1339 }
 0x51a   :  { %v667_v6 = vadd.f32 %v662_v35, %v587_v57  ;;  %v1344_v4 = vadd.f32 %v1340_v33, %v1264_v15 }
 0x51c   :  { %v1384_v55 = vadd.f32 %v2631_v26, %v1344_v4  ;;  %v2635_v4 = vld [vmem:[#allocation16_spill] sm:$0xff] }
 0x51d   :  { %v682_v23 = vpop.permute.xlu1 %681 }
 0x51e   :  { %1392 = vst.msk [vmem:[%s2590_s4 + $0x38] sm:$0xff] %vm123_vm1, %v1384_v55  ;;  %v687_v45 = vadd.f32 %v682_v23, %v607_v0 }
 0x521   :  { %v702_v54 = vpop.permute.xlu1 %701 }
 0x522   :  { %v707_v47 = vadd.f32 %v702_v54, %v627_v61 }
 0x524   :  { %v779_v48 = vadd.f32 %v777_v9, %v707_v47  ;;  %v2636_v47 = vld [vmem:[#allocation10_spill] sm:$0xff] }
 0x525   :  { %v722_v18 = vpop.permute.xlu1 %721 }
 0x526   :  { %v727_v27 = vadd.f32 %v722_v18, %v647_v40  ;;  %v835_v10 = vadd.f32 %v2473_v60, %v779_v48  ;;  %v1077_v40 = vmul.f32 %v2375_v46, %v2087_v50 }
 0x528   :  { %v791_v30 = vadd.f32 %v789_v22, %v727_v27 }
 0x529   :  { %v742_v21 = vpop.permute.xlu1 %741 }
 0x52a   :  { %v747_v44 = vadd.f32 %v742_v21, %v667_v6 }
 0x52c   :  { %v803_v43 = vadd.f32 %v2634_v5, %v747_v44 }
 0x52d   :  { %v762_v11 = vpop.permute.xlu1 %761 }
 0x52e   :  { %v767_v29 = vadd.f32 %v762_v11, %v687_v45 }
 0x530   :  { %v815_v17 = vadd.f32 %v813_v41, %v767_v29 }
 0x531   :  { %v850_v49 = vpop.permute.xlu1 %849 }
 0x532   :  { %v855_v28 = vadd.f32 %v850_v49, %v791_v30 }
 0x535   :  { %v870_v14 = vpop.permute.xlu1 %869 }
 0x536   :  { %v875_v38 = vadd.f32 %v870_v14, %v803_v43 }
 0x539   :  { %v890_v58 = vpop.permute.xlu1 %889 }
 0x53a   :  { %v895_v25 = vadd.f32 %v890_v58, %v815_v17  ;;  %v2638_v17 = vld [vmem:[#allocation22_spill] sm:$0xff] }
 0x53d   :  { %v910_v37 = vpop.permute.xlu1 %909 }
 0x53e   :  { %v915_v52 = vadd.f32 %v910_v37, %v835_v10 }
 0x541   :  { %v930_v1 = vpop.permute.xlu1 %929 }
 0x542   :  { %v935_v63 = vadd.f32 %v930_v1, %v855_v28 }
 0x545   :  { %v950_v60 = vpop.permute.xlu1 %949 }
 0x546   :  { %v955_v35 = vadd.f32 %v950_v60, %v875_v38 }
 0x549   :  { %v970_v61 = vpop.permute.xlu1 %969 }
 0x54a   :  { %v975_v6 = vadd.f32 %v970_v61, %v895_v25 }
 0x54d   :  { %v990_v12 = vpop.permute.xlu1 %989 }
 0x54e   :  { %v995_v39 = vadd.f32 %v990_v12, %v915_v52 }
 0x550   :  { %v1067_v56 = vadd.f32 %v1065_v34, %v995_v39 }
 0x551   :  { %v1010_v19 = vpop.permute.xlu1 %1009 }
 0x552   :  { %v1015_v15 = vadd.f32 %v1010_v19, %v935_v63  ;;  %v1123_v57 = vadd.f32 %v1118_v7, %v1067_v56 }
 0x554   :  { %v1079_v33 = vadd.f32 %v1077_v40, %v1015_v15 }
 0x555   :  { %v1030_v51 = vpop.permute.xlu1 %1029 }
 0x556   :  { %v1035_v53 = vadd.f32 %v1030_v51, %v955_v35 }
 0x558   :  { %v1091_v0 = vadd.f32 %v2635_v4, %v1035_v53 }
 0x559   :  { %v1050_v26 = vpop.permute.xlu1 %1049 }
 0x55a   :  { %v1055_v55 = vadd.f32 %v1050_v26, %v975_v6 }
 0x55c   :  { %v1103_v23 = vadd.f32 %v1101_v8, %v1055_v55 }
 0x55d   :  { %v1120_v45 = vpop.permute.xlu1 %1119 }
 0x55e   :  { %v1124_v54 = vadd.f32 %v1120_v45, %v2492_v42 }
 0x560   :  { %v1204_v46 = vadd.f32 %v2482_v62, %v1124_v54 }
 0x561   :  { %v1160_v2 = vpop.permute.xlu1 %1159 }
 0x562   :  { %v1284_v7 = vadd.f32 %v2507_v16, %v1204_v46  ;;  %v1164_v9 = vadd.f32 %v1160_v2, %v2502_v20 }
 0x564   :  { %v1354_v48 = vadd.f32 %v2636_v47, %v1284_v7  ;;  %v1244_v18 = vadd.f32 %v2490_v32, %v1164_v9 }
 0x565   :  { %v1138_v24 = vpop.permute.xlu1 %1137 }
 0x566   :  { %1386 = vst.msk [vmem:[%s2590_s4 + $0x8] sm:$0xff] %vm123_vm1, %v1354_v48  ;;  %v1324_v50 = vadd.f32 %v2521_v3, %v1244_v18  ;;  %v1143_v21 = vadd.f32 %v1138_v24, %v1079_v33 }
 0x568   :  { %v1374_v42 = vadd.f32 %v2637_v13, %v1324_v50 }
 0x569   :  { %v1158_v62 = vpop.permute.xlu1 %1157 }
 0x56a   :  { %1390 = vst.msk [vmem:[%s2590_s4 + $0x28] sm:$0xff] %vm123_vm1, %v1374_v42  ;;  %v1163_v11 = vadd.f32 %v1158_v62, %v1091_v0 }
 0x56d   :  { %v1178_v20 = vpop.permute.xlu1 %1177 }
 0x56e   :  { %v1183_v14 = vadd.f32 %v1178_v20, %v1103_v23 }
 0x571   :  { %v1198_v16 = vpop.permute.xlu1 %1197 }
 0x572   :  { %v1203_v10 = vadd.f32 %v1198_v16, %v1123_v57 }
 0x575   :  { %v1218_v22 = vpop.permute.xlu1 %1217 }
 0x576   :  { %v1223_v5 = vadd.f32 %v1218_v22, %v1143_v21 }
 0x579   :  { %v1238_v32 = vpop.permute.xlu1 %1237 }
 0x57a   :  { %v1243_v29 = vadd.f32 %v1238_v32, %v1163_v11 }
 0x57d   :  { %v1258_v27 = vpop.permute.xlu1 %1257 }
 0x581   :  { %v1278_v30 = vpop.permute.xlu1 %1277 }
 0x582   :  { %v1283_v44 = vadd.f32 %v1278_v30, %v1203_v10 }
 0x584   :  { %v1353_v3 = vadd.f32 %v2431_v31, %v1283_v44  ;;  %v1263_v31 = vadd.f32 %v1258_v27, %v1183_v14 }
 0x585   :  { %v1298_v43 = vpop.permute.xlu1 %1297 }
 0x586   :  { %1385 = vst.msk [vmem:[%s2590_s4] sm:$0xff] %vm123_vm1, %v1353_v3  ;;  %v1303_v41 = vadd.f32 %v1298_v43, %v1223_v5 }
 0x588   :  { %v1363_v49 = vadd.f32 %v2638_v17, %v1303_v41 }
 0x589   :  { %v1318_v28 = vpop.permute.xlu1 %1317 }
 0x58a   :  { %1387 = vst.msk [vmem:[%s2590_s4 + $0x10] sm:$0xff] %vm123_vm1, %v1363_v49  ;;  %v1323_v38 = vadd.f32 %v1318_v28, %v1243_v29 }
 0x58c   :  { %v1373_v58 = vadd.f32 %v2438_v59, %v1323_v38 }
 0x58d   :  { %v1338_v25 = vpop.permute.xlu1 %1337 }
 0x58e   :  { %1389 = vst.msk [vmem:[%s2590_s4 + $0x20] sm:$0xff] %vm123_vm1, %v1373_v58  ;;  %v1343_v37 = vadd.f32 %v1338_v25, %v1263_v31 }
 0x590   :  { %v1383_v1 = vadd.f32 %v2443_v36, %v1343_v37 }
 0x592   :  { %1391 = vst.msk [vmem:[%s2590_s4 + $0x30] sm:$0xff] %vm123_vm1, %v1383_v1 }
 0x593   :  { %1397 = vsyncpa [#allocation3], 1 }

</bundles_post_ra>
